<compile_context>
chip_gen: v7x
topology: tpu7x:2x2x1
jax: 0.10.0
libtpu: 0.0.40
codegen_flags: <defaults>
</compile_context>

<pallas_src>
import functools

import jax
import jax.numpy as jnp
from jax import lax
from jax.experimental import pallas as pl
from jax.experimental.pallas import tpu as pltpu

_NEG_BIG = -1e30


def _round_up(n, m):
    return ((n + m - 1) // m) * m


def _layer_norm(y, gamma, beta, eps=1e-5):
    # One-pass moments (sum and sum-of-squares are independent reductions ->
    # shorter XLU critical path than mean -> center -> mean(c*c)).
    inv_n = 1.0 / y.shape[-1]
    mean = jnp.sum(y, axis=-1, keepdims=True) * inv_n
    ex2 = jnp.sum(y * y, axis=-1, keepdims=True) * inv_n
    var = jnp.maximum(ex2 - mean * mean, 0.0)
    return (y - mean) * lax.rsqrt(var + eps) * gamma + beta


def _eac_kernel(x_ref, w1_ref, w2_ref, wac_ref, wpol_ref, prm_ref, out_ref,
                *, action_space):
    h1d = w1_ref.shape[1]
    h2d = w2_ref.shape[1]
    opd = wpol_ref.shape[1]
    P = prm_ref[...]            # (16, W) f32 parameter slab (rows documented in pack_params)

    # ---- trunk: fc1 -> LN1 -> relu -> fc2 -> LN2 -> relu  (dropout = identity)
    h1 = jnp.dot(x_ref[...], w1_ref[...], preferred_element_type=jnp.float32)
    h1 = jnp.maximum(_layer_norm(h1 + P[0:1, :h1d], P[1:2, :h1d], P[2:3, :h1d]), 0.0)

    h2 = jnp.dot(h1.astype(w2_ref.dtype), w2_ref[...],
                 preferred_element_type=jnp.float32)
    h2 = jnp.maximum(_layer_norm(h2 + P[3:4, :h2d], P[4:5, :h2d], P[5:6, :h2d]), 0.0)

    # ---- fused actor_fc1 | critic_fc1 matmul -> [TB, 2*H2]
    hac = jnp.dot(h2.astype(wac_ref.dtype), wac_ref[...],
                  preferred_element_type=jnp.float32) + P[6:7, :2 * h2d]
    a_h = jnp.maximum(_layer_norm(hac[:, :h2d], P[7:8, :h2d], P[8:9, :h2d]) + h2, 0.0)
    c_h = jnp.maximum(_layer_norm(hac[:, h2d:], P[9:10, :h2d], P[10:11, :h2d]) + h2, 0.0)

    # ---- actor head: lane-dense [H2, 128] MXU matmul (cols >= A are zero)
    logits = jnp.dot(a_h.astype(wpol_ref.dtype), wpol_ref[...],
                     preferred_element_type=jnp.float32) + P[11:12, :opd]

    # ---- critic head: VPU multiply + lane reduce (no zero-padded MXU pass)
    c_bf = c_h.astype(jnp.bfloat16).astype(jnp.float32)   # match bf16 activation rounding
    value = jnp.sum(c_bf * P[12:13, :h2d], axis=-1, keepdims=True) + P[13:14, 0:1]

    # lanes [0, A): policy logits -> clamp(-20, 20) -> softmax (f32 throughout)
    # lane A      : critic value
    # lanes  > A  : zero padding
    col = lax.broadcasted_iota(jnp.int32, logits.shape, 1)
    is_policy = col < action_space
    masked = jnp.where(is_policy, jnp.clip(logits, -20.0, 20.0), _NEG_BIG)
    m = jnp.max(masked, axis=-1, keepdims=True)
    e = jnp.exp(masked - m)
    policy = e / jnp.sum(e, axis=-1, keepdims=True)       # exact divide (row sums == 1)

    out_ref[...] = jnp.where(
        is_policy, policy,
        jnp.where(col == action_space, value, 0.0)).astype(out_ref.dtype)


def enhanced_actor_critic_forward(x, packed, *, action_space, block_b=256,
                                  num_cores=1):
    """x: [B, input_dim] f32. Returns (policy [B, A], value [B, 1]) in f32.

    num_cores: set to 2 on v7x so the batch grid has >= 2 balanced tiles and
    both TensorCores get work; perf-neutral on v5e/v6e.
    """
    batch, input_dim = x.shape
    k_pad = packed['w1'].shape[0]
    out_pad = packed['w_pol'].shape[1]
    assert input_dim <= k_pad

    # Few, fat tiles: tb is a multiple of 16 (bf16 sublane packing), single grid
    # step when B <= block_b, but at least `num_cores` tiles when requested.
    tb = max(16, _round_up(pl.cdiv(batch, max(num_cores, 1)), 16))
    tb = min(tb, max(16, _round_up(block_b, 16)))
    batch_p = _round_up(batch, tb)

    x = jnp.pad(x, ((0, batch_p - batch), (0, k_pad - input_dim))).astype(jnp.bfloat16)

    full = lambda a: pl.BlockSpec(a.shape, lambda i: (0,) * a.ndim)
    kernel = functools.partial(_eac_kernel, action_space=action_space)

    # Explicit scoped-VMEM budget from the actual footprint (weights/params are
    # double-buffered by the default pipeline even though they never change).
    weight_bytes = sum(int(packed[k].size) * packed[k].dtype.itemsize
                       for k in ('w1', 'w2', 'w_ac', 'w_pol', 'params'))
    io_bytes = tb * (k_pad + out_pad) * 2                      # bf16 in + bf16 out
    vmem_limit = int(min(48 << 20, max(16 << 20, 4 * 2 * (weight_bytes + io_bytes))))

    out = pl.pallas_call(
        kernel,
        out_shape=jax.ShapeDtypeStruct((batch_p, out_pad), jnp.bfloat16),
        grid_spec=pltpu.PrefetchScalarGridSpec(
            num_scalar_prefetch=0,
            grid=(batch_p // tb,),
            in_specs=[
                pl.BlockSpec((tb, k_pad), lambda i: (i, 0)),   # x tile
                full(packed['w1']), full(packed['w2']),
                full(packed['w_ac']), full(packed['w_pol']),   # resident weights
                full(packed['params']),                        # single param slab
            ],
            out_specs=pl.BlockSpec((tb, out_pad), lambda i: (i, 0)),
        ),
        compiler_params=pltpu.CompilerParams(
            dimension_semantics=("parallel",),
            vmem_limit_bytes=vmem_limit),
    )(x, packed['w1'], packed['w2'], packed['w_ac'], packed['w_pol'],
      packed['params'])

    policy = out[:batch, :action_space].astype(jnp.float32)
    value = out[:batch, action_space:action_space + 1].astype(jnp.float32)
    return policy, value


def pack_params(raw, action_space):
    """Convert PyTorch-layout params into the fused / lane-dense kernel layout."""
    input_dim = raw['fc1_w'].shape[1]
    hidden1 = raw['fc1_w'].shape[0]
    hidden2 = raw['fc2_w'].shape[0]
    a = action_space
    bf = jnp.bfloat16

    k_pad = _round_up(input_dim, 128)                  # lane-dense fc1 K dim
    out_pad = max(128, _round_up(a + 1, 128))          # lane-dense output slab
    width = _round_up(max(hidden1, hidden2, 2 * hidden2, out_pad), 128)

    w1 = jnp.zeros((k_pad, hidden1), jnp.float32).at[:input_dim].set(raw['fc1_w'].T)
    w_pol = jnp.zeros((hidden2, out_pad), jnp.float32).at[:, :a].set(raw['aout_w'].T)

    # Single f32 parameter slab (one DMA stream). Row layout:
    #   0-2: fc1 bias, ln1 gamma, ln1 beta            (width H1)
    #   3-5: fc2 bias, ln2 gamma, ln2 beta            (width H2)
    #   6  : [actor_fc1 bias | critic_fc1 bias]       (width 2*H2)
    #   7-10: lna gamma, lna beta, lnc gamma, lnc beta(width H2)
    #   11 : policy head bias (lanes [0, A))          (width out_pad)
    #   12 : critic weight row (bf16-rounded)         (width H2)
    #   13 : critic bias (lane 0)
    rows = {
        0: raw['fc1_b'], 1: raw['ln1_g'], 2: raw['ln1_b'],
        3: raw['fc2_b'], 4: raw['ln2_g'], 5: raw['ln2_b'],
        6: jnp.concatenate([raw['afc1_b'], raw['cfc1_b']]),
        7: raw['lna_g'], 8: raw['lna_b'],
        9: raw['lnc_g'], 10: raw['lnc_b'],
        11: jnp.zeros((out_pad,), jnp.float32).at[:a].set(raw['aout_b']),
        12: raw['cout_w'][0].astype(bf).astype(jnp.float32),
        13: raw['cout_b'],
    }
    prm = jnp.zeros((16, width), jnp.float32)
    for r_i, vec in rows.items():
        prm = prm.at[r_i, :vec.shape[0]].set(vec)

    return dict(
        w1=w1.astype(bf),
        w2=raw['fc2_w'].T.astype(bf),
        w_ac=jnp.concatenate([raw['afc1_w'].T, raw['cfc1_w'].T], axis=1).astype(bf),
        w_pol=w_pol.astype(bf),
        params=prm,
    )


def init_raw_params(key, input_dim, hidden1, hidden2, action_space):
    """PyTorch-layout params (weights [out, in]), kaiming-normal weights.
    Biases / LN affine params get small random values (module inits them to
    0 / 1,0) so the bias and affine-LN code paths are exercised by the check."""
    it = iter(jax.random.split(key, 20))

    def lin(out_f, in_f):
        w = jax.random.normal(next(it), (out_f, in_f), jnp.float32) * jnp.sqrt(2.0 / in_f)
        b = 0.05 * jax.random.normal(next(it), (out_f,), jnp.float32)
        return w, b

    def lnp(n):
        g = 1.0 + 0.1 * jax.random.normal(next(it), (n,), jnp.float32)
        b = 0.1 * jax.random.normal(next(it), (n,), jnp.float32)
        return g, b

    p = {}
    p['fc1_w'], p['fc1_b'] = lin(hidden1, input_dim)
    p['ln1_g'], p['ln1_b'] = lnp(hidden1)
    p['fc2_w'], p['fc2_b'] = lin(hidden2, hidden1)
    p['ln2_g'], p['ln2_b'] = lnp(hidden2)
    p['afc1_w'], p['afc1_b'] = lin(hidden2, hidden2)
    p['lna_g'], p['lna_b'] = lnp(hidden2)
    p['aout_w'], p['aout_b'] = lin(action_space, hidden2)
    p['cfc1_w'], p['cfc1_b'] = lin(hidden2, hidden2)
    p['lnc_g'], p['lnc_b'] = lnp(hidden2)
    p['cout_w'], p['cout_b'] = lin(1, hidden2)
    return p


def reference_forward(x, raw, action_space):
    """Pure-JAX mirror of the PyTorch forward (eval mode), with the same bf16
    rounding of inputs/weights/activations the kernel applies."""
    r = lambda t: t.astype(jnp.bfloat16).astype(jnp.float32)

    def ln(y, g, b, eps=1e-5):
        mu = jnp.mean(y, -1, keepdims=True)
        c = y - mu
        var = jnp.mean(c * c, -1, keepdims=True)
        return c * lax.rsqrt(var + eps) * g + b

    xr = r(x)
    h1 = jnp.maximum(ln(xr @ r(raw['fc1_w'].T) + raw['fc1_b'],
                        raw['ln1_g'], raw['ln1_b']), 0.0)
    h2 = jnp.maximum(ln(r(h1) @ r(raw['fc2_w'].T) + raw['fc2_b'],
                        raw['ln2_g'], raw['ln2_b']), 0.0)
    a = jnp.maximum(ln(r(h2) @ r(raw['afc1_w'].T) + raw['afc1_b'],
                       raw['lna_g'], raw['lna_b']) + h2, 0.0)
    c = jnp.maximum(ln(r(h2) @ r(raw['cfc1_w'].T) + raw['cfc1_b'],
                       raw['lnc_g'], raw['lnc_b']) + h2, 0.0)
    logits = jnp.clip(r(a) @ r(raw['aout_w'].T) + raw['aout_b'], -20.0, 20.0)
    policy = jax.nn.softmax(logits, axis=-1)
    value = r(c) @ r(raw['cout_w'].T) + raw['cout_b']
    return policy, value


if __name__ == "__main__":
    # Small shapes consistent with the module: hidden1 = hidden2 = 128, A = 4.
    batch, input_dim, hidden1, hidden2, action_space = 32, 32, 128, 128, 4

    key = jax.random.PRNGKey(0)
    k_param, k_x = jax.random.split(key)
    raw = init_raw_params(k_param, input_dim, hidden1, hidden2, action_space)
    x = jax.random.normal(k_x, (batch, input_dim), jnp.float32)

    packed = pack_params(raw, action_space)
    # Default block_b=256 -> one fat batch tile / single grid step at this B
    # (pass num_cores=2 on v7x to split the batch across both TensorCores).
    policy, value = enhanced_actor_critic_forward(
        x, packed, action_space=action_space)
    jax.block_until_ready((policy, value))

    policy_ref, value_ref = reference_forward(x, raw, action_space)
    assert policy.shape == (batch, action_space) and value.shape == (batch, 1)
    assert jnp.allclose(policy, policy_ref, atol=2e-2, rtol=2e-2), (
        float(jnp.max(jnp.abs(policy - policy_ref))))
    assert jnp.allclose(value, value_ref, atol=2e-2, rtol=2e-2), (
        float(jnp.max(jnp.abs(value - value_ref))))
    assert jnp.allclose(jnp.sum(policy, axis=-1), 1.0, atol=5e-3)

    print("KERNEL_OK")
</pallas_src>

<mosaic_0001>
module attributes {stable_mosaic.version = 11 : i64} {
  func.func @_eac_kernel(%arg0: i32, %arg1: memref<32x128xbf16, #tpu.memory_space<vmem>>, %arg2: memref<128x128xbf16, #tpu.memory_space<vmem>>, %arg3: memref<128x128xbf16, #tpu.memory_space<vmem>>, %arg4: memref<128x256xbf16, #tpu.memory_space<vmem>>, %arg5: memref<128x128xbf16, #tpu.memory_space<vmem>>, %arg6: memref<16x256xf32, #tpu.memory_space<vmem>>, %arg7: memref<32x128xbf16, #tpu.memory_space<vmem>>) attributes {dimension_semantics = [#tpu.dimension_semantics<parallel>], iteration_bounds = array<i64: 1>, scalar_prefetch = 0 : i64, scratch_operands = 0 : i64, tpu.core_type = #tpu.core_type<tc>, window_params = [{transform_indices = @transform_0, window_bounds = array<i64: 32, 128>}, {pipeline_mode = #tpu.pipeline_mode<synchronous>, transform_indices = @transform_1, window_bounds = array<i64: 128, 128>}, {pipeline_mode = #tpu.pipeline_mode<synchronous>, transform_indices = @transform_2, window_bounds = array<i64: 128, 128>}, {pipeline_mode = #tpu.pipeline_mode<synchronous>, transform_indices = @transform_3, window_bounds = array<i64: 128, 256>}, {pipeline_mode = #tpu.pipeline_mode<synchronous>, transform_indices = @transform_4, window_bounds = array<i64: 128, 128>}, {pipeline_mode = #tpu.pipeline_mode<synchronous>, transform_indices = @transform_5, window_bounds = array<i64: 16, 256>}, {transform_indices = @transform_6, window_bounds = array<i64: 32, 128>}]} {
    %c0 = arith.constant 0 : index
    %c0_0 = arith.constant 0 : index
    %0 = vector.load %arg6[%c0, %c0_0] : memref<16x256xf32, #tpu.memory_space<vmem>>, vector<16x256xf32>
    %c0_1 = arith.constant 0 : index
    %c0_2 = arith.constant 0 : index
    %1 = vector.load %arg1[%c0_1, %c0_2] : memref<32x128xbf16, #tpu.memory_space<vmem>>, vector<32x128xbf16>
    %c0_3 = arith.constant 0 : index
    %c0_4 = arith.constant 0 : index
    %2 = vector.load %arg2[%c0_3, %c0_4] : memref<128x128xbf16, #tpu.memory_space<vmem>>, vector<128x128xbf16>
    %cst = arith.constant dense<0.000000e+00> : vector<32x128xf32>
    %3 = tpu.matmul %1, %2, %cst {dimension_numbers = #tpu.dot_dimension_numbers<[1], [0], [0], [1], [0, 0, 1, 1], [], []>} : vector<32x128xbf16>, vector<128x128xbf16>, vector<32x128xf32> -> vector<32x128xf32>
    %4 = vector.extract_strided_slice %0 {offsets = [0, 0], sizes = [1, 128], strides = [1, 1]} : vector<16x256xf32> to vector<1x128xf32>
    %5 = vector.broadcast %4 : vector<1x128xf32> to vector<32x128xf32>
    %6 = arith.addf %3, %5 : vector<32x128xf32>
    %7 = vector.extract_strided_slice %0 {offsets = [1, 0], sizes = [1, 128], strides = [1, 1]} : vector<16x256xf32> to vector<1x128xf32>
    %8 = vector.extract_strided_slice %0 {offsets = [2, 0], sizes = [1, 128], strides = [1, 1]} : vector<16x256xf32> to vector<1x128xf32>
    %cst_5 = arith.constant dense<0.000000e+00> : vector<32xf32>
    %9 = vector.multi_reduction <add>, %6, %cst_5 [1] : vector<32x128xf32> to vector<32xf32>
    %10 = vector.shape_cast %9 : vector<32xf32> to vector<32x1xf32>
    %cst_6 = arith.constant 7.812500e-03 : f32
    %11 = vector.broadcast %cst_6 : f32 to vector<32x1xf32>
    %12 = arith.mulf %10, %11 : vector<32x1xf32>
    %13 = arith.mulf %6, %6 : vector<32x128xf32>
    %cst_7 = arith.constant dense<0.000000e+00> : vector<32xf32>
    %14 = vector.multi_reduction <add>, %13, %cst_7 [1] : vector<32x128xf32> to vector<32xf32>
    %15 = vector.shape_cast %14 : vector<32xf32> to vector<32x1xf32>
    %cst_8 = arith.constant 7.812500e-03 : f32
    %16 = vector.broadcast %cst_8 : f32 to vector<32x1xf32>
    %17 = arith.mulf %15, %16 : vector<32x1xf32>
    %18 = arith.mulf %12, %12 : vector<32x1xf32>
    %19 = arith.subf %17, %18 : vector<32x1xf32>
    %cst_9 = arith.constant 0.000000e+00 : f32
    %20 = vector.broadcast %cst_9 : f32 to vector<32x1xf32>
    %21 = arith.maximumf %19, %20 : vector<32x1xf32>
    %22 = vector.broadcast %12 : vector<32x1xf32> to vector<32x128xf32>
    %23 = arith.subf %6, %22 : vector<32x128xf32>
    %cst_10 = arith.constant 9.99999974E-6 : f32
    %24 = vector.broadcast %cst_10 : f32 to vector<32x1xf32>
    %25 = arith.addf %21, %24 : vector<32x1xf32>
    %26 = math.rsqrt %25 : vector<32x1xf32>
    %27 = vector.broadcast %26 : vector<32x1xf32> to vector<32x128xf32>
    %28 = arith.mulf %23, %27 : vector<32x128xf32>
    %29 = vector.broadcast %7 : vector<1x128xf32> to vector<32x128xf32>
    %30 = arith.mulf %28, %29 : vector<32x128xf32>
    %31 = vector.broadcast %8 : vector<1x128xf32> to vector<32x128xf32>
    %32 = arith.addf %30, %31 : vector<32x128xf32>
    %cst_11 = arith.constant 0.000000e+00 : f32
    %33 = vector.broadcast %cst_11 : f32 to vector<32x128xf32>
    %34 = arith.maximumf %32, %33 : vector<32x128xf32>
    %35 = arith.truncf %34 : vector<32x128xf32> to vector<32x128xbf16>
    %c0_12 = arith.constant 0 : index
    %c0_13 = arith.constant 0 : index
    %36 = vector.load %arg3[%c0_12, %c0_13] : memref<128x128xbf16, #tpu.memory_space<vmem>>, vector<128x128xbf16>
    %cst_14 = arith.constant dense<0.000000e+00> : vector<32x128xf32>
    %37 = tpu.matmul %35, %36, %cst_14 {dimension_numbers = #tpu.dot_dimension_numbers<[1], [0], [0], [1], [0, 0, 1, 1], [], []>} : vector<32x128xbf16>, vector<128x128xbf16>, vector<32x128xf32> -> vector<32x128xf32>
    %38 = vector.extract_strided_slice %0 {offsets = [3, 0], sizes = [1, 128], strides = [1, 1]} : vector<16x256xf32> to vector<1x128xf32>
    %39 = vector.broadcast %38 : vector<1x128xf32> to vector<32x128xf32>
    %40 = arith.addf %37, %39 : vector<32x128xf32>
    %41 = vector.extract_strided_slice %0 {offsets = [4, 0], sizes = [1, 128], strides = [1, 1]} : vector<16x256xf32> to vector<1x128xf32>
    %42 = vector.extract_strided_slice %0 {offsets = [5, 0], sizes = [1, 128], strides = [1, 1]} : vector<16x256xf32> to vector<1x128xf32>
    %cst_15 = arith.constant dense<0.000000e+00> : vector<32xf32>
    %43 = vector.multi_reduction <add>, %40, %cst_15 [1] : vector<32x128xf32> to vector<32xf32>
    %44 = vector.shape_cast %43 : vector<32xf32> to vector<32x1xf32>
    %cst_16 = arith.constant 7.812500e-03 : f32
    %45 = vector.broadcast %cst_16 : f32 to vector<32x1xf32>
    %46 = arith.mulf %44, %45 : vector<32x1xf32>
    %47 = arith.mulf %40, %40 : vector<32x128xf32>
    %cst_17 = arith.constant dense<0.000000e+00> : vector<32xf32>
    %48 = vector.multi_reduction <add>, %47, %cst_17 [1] : vector<32x128xf32> to vector<32xf32>
    %49 = vector.shape_cast %48 : vector<32xf32> to vector<32x1xf32>
    %cst_18 = arith.constant 7.812500e-03 : f32
    %50 = vector.broadcast %cst_18 : f32 to vector<32x1xf32>
    %51 = arith.mulf %49, %50 : vector<32x1xf32>
    %52 = arith.mulf %46, %46 : vector<32x1xf32>
    %53 = arith.subf %51, %52 : vector<32x1xf32>
    %cst_19 = arith.constant 0.000000e+00 : f32
    %54 = vector.broadcast %cst_19 : f32 to vector<32x1xf32>
    %55 = arith.maximumf %53, %54 : vector<32x1xf32>
    %56 = vector.broadcast %46 : vector<32x1xf32> to vector<32x128xf32>
    %57 = arith.subf %40, %56 : vector<32x128xf32>
    %cst_20 = arith.constant 9.99999974E-6 : f32
    %58 = vector.broadcast %cst_20 : f32 to vector<32x1xf32>
    %59 = arith.addf %55, %58 : vector<32x1xf32>
    %60 = math.rsqrt %59 : vector<32x1xf32>
    %61 = vector.broadcast %60 : vector<32x1xf32> to vector<32x128xf32>
    %62 = arith.mulf %57, %61 : vector<32x128xf32>
    %63 = vector.broadcast %41 : vector<1x128xf32> to vector<32x128xf32>
    %64 = arith.mulf %62, %63 : vector<32x128xf32>
    %65 = vector.broadcast %42 : vector<1x128xf32> to vector<32x128xf32>
    %66 = arith.addf %64, %65 : vector<32x128xf32>
    %cst_21 = arith.constant 0.000000e+00 : f32
    %67 = vector.broadcast %cst_21 : f32 to vector<32x128xf32>
    %68 = arith.maximumf %66, %67 : vector<32x128xf32>
    %69 = arith.truncf %68 : vector<32x128xf32> to vector<32x128xbf16>
    %c0_22 = arith.constant 0 : index
    %c0_23 = arith.constant 0 : index
    %70 = vector.load %arg4[%c0_22, %c0_23] : memref<128x256xbf16, #tpu.memory_space<vmem>>, vector<128x256xbf16>
    %cst_24 = arith.constant dense<0.000000e+00> : vector<32x256xf32>
    %71 = tpu.matmul %69, %70, %cst_24 {dimension_numbers = #tpu.dot_dimension_numbers<[1], [0], [0], [1], [0, 0, 1, 1], [], []>} : vector<32x128xbf16>, vector<128x256xbf16>, vector<32x256xf32> -> vector<32x256xf32>
    %72 = vector.extract_strided_slice %0 {offsets = [6, 0], sizes = [1, 256], strides = [1, 1]} : vector<16x256xf32> to vector<1x256xf32>
    %73 = vector.broadcast %72 : vector<1x256xf32> to vector<32x256xf32>
    %74 = arith.addf %71, %73 : vector<32x256xf32>
    %75 = vector.extract_strided_slice %74 {offsets = [0, 0], sizes = [32, 128], strides = [1, 1]} : vector<32x256xf32> to vector<32x128xf32>
    %76 = vector.extract_strided_slice %0 {offsets = [7, 0], sizes = [1, 128], strides = [1, 1]} : vector<16x256xf32> to vector<1x128xf32>
    %77 = vector.extract_strided_slice %0 {offsets = [8, 0], sizes = [1, 128], strides = [1, 1]} : vector<16x256xf32> to vector<1x128xf32>
    %cst_25 = arith.constant dense<0.000000e+00> : vector<32xf32>
    %78 = vector.multi_reduction <add>, %75, %cst_25 [1] : vector<32x128xf32> to vector<32xf32>
    %79 = vector.shape_cast %78 : vector<32xf32> to vector<32x1xf32>
    %cst_26 = arith.constant 7.812500e-03 : f32
    %80 = vector.broadcast %cst_26 : f32 to vector<32x1xf32>
    %81 = arith.mulf %79, %80 : vector<32x1xf32>
    %82 = arith.mulf %75, %75 : vector<32x128xf32>
    %cst_27 = arith.constant dense<0.000000e+00> : vector<32xf32>
    %83 = vector.multi_reduction <add>, %82, %cst_27 [1] : vector<32x128xf32> to vector<32xf32>
    %84 = vector.shape_cast %83 : vector<32xf32> to vector<32x1xf32>
    %cst_28 = arith.constant 7.812500e-03 : f32
    %85 = vector.broadcast %cst_28 : f32 to vector<32x1xf32>
    %86 = arith.mulf %84, %85 : vector<32x1xf32>
    %87 = arith.mulf %81, %81 : vector<32x1xf32>
    %88 = arith.subf %86, %87 : vector<32x1xf32>
    %cst_29 = arith.constant 0.000000e+00 : f32
    %89 = vector.broadcast %cst_29 : f32 to vector<32x1xf32>
    %90 = arith.maximumf %88, %89 : vector<32x1xf32>
    %91 = vector.broadcast %81 : vector<32x1xf32> to vector<32x128xf32>
    %92 = arith.subf %75, %91 : vector<32x128xf32>
    %cst_30 = arith.constant 9.99999974E-6 : f32
    %93 = vector.broadcast %cst_30 : f32 to vector<32x1xf32>
    %94 = arith.addf %90, %93 : vector<32x1xf32>
    %95 = math.rsqrt %94 : vector<32x1xf32>
    %96 = vector.broadcast %95 : vector<32x1xf32> to vector<32x128xf32>
    %97 = arith.mulf %92, %96 : vector<32x128xf32>
    %98 = vector.broadcast %76 : vector<1x128xf32> to vector<32x128xf32>
    %99 = arith.mulf %97, %98 : vector<32x128xf32>
    %100 = vector.broadcast %77 : vector<1x128xf32> to vector<32x128xf32>
    %101 = arith.addf %99, %100 : vector<32x128xf32>
    %102 = arith.addf %101, %68 : vector<32x128xf32>
    %cst_31 = arith.constant 0.000000e+00 : f32
    %103 = vector.broadcast %cst_31 : f32 to vector<32x128xf32>
    %104 = arith.maximumf %102, %103 : vector<32x128xf32>
    %105 = vector.extract_strided_slice %74 {offsets = [0, 128], sizes = [32, 128], strides = [1, 1]} : vector<32x256xf32> to vector<32x128xf32>
    %106 = vector.extract_strided_slice %0 {offsets = [9, 0], sizes = [1, 128], strides = [1, 1]} : vector<16x256xf32> to vector<1x128xf32>
    %107 = vector.extract_strided_slice %0 {offsets = [10, 0], sizes = [1, 128], strides = [1, 1]} : vector<16x256xf32> to vector<1x128xf32>
    %cst_32 = arith.constant dense<0.000000e+00> : vector<32xf32>
    %108 = vector.multi_reduction <add>, %105, %cst_32 [1] : vector<32x128xf32> to vector<32xf32>
    %109 = vector.shape_cast %108 : vector<32xf32> to vector<32x1xf32>
    %cst_33 = arith.constant 7.812500e-03 : f32
    %110 = vector.broadcast %cst_33 : f32 to vector<32x1xf32>
    %111 = arith.mulf %109, %110 : vector<32x1xf32>
    %112 = arith.mulf %105, %105 : vector<32x128xf32>
    %cst_34 = arith.constant dense<0.000000e+00> : vector<32xf32>
    %113 = vector.multi_reduction <add>, %112, %cst_34 [1] : vector<32x128xf32> to vector<32xf32>
    %114 = vector.shape_cast %113 : vector<32xf32> to vector<32x1xf32>
    %cst_35 = arith.constant 7.812500e-03 : f32
    %115 = vector.broadcast %cst_35 : f32 to vector<32x1xf32>
    %116 = arith.mulf %114, %115 : vector<32x1xf32>
    %117 = arith.mulf %111, %111 : vector<32x1xf32>
    %118 = arith.subf %116, %117 : vector<32x1xf32>
    %cst_36 = arith.constant 0.000000e+00 : f32
    %119 = vector.broadcast %cst_36 : f32 to vector<32x1xf32>
    %120 = arith.maximumf %118, %119 : vector<32x1xf32>
    %121 = vector.broadcast %111 : vector<32x1xf32> to vector<32x128xf32>
    %122 = arith.subf %105, %121 : vector<32x128xf32>
    %cst_37 = arith.constant 9.99999974E-6 : f32
    %123 = vector.broadcast %cst_37 : f32 to vector<32x1xf32>
    %124 = arith.addf %120, %123 : vector<32x1xf32>
    %125 = math.rsqrt %124 : vector<32x1xf32>
    %126 = vector.broadcast %125 : vector<32x1xf32> to vector<32x128xf32>
    %127 = arith.mulf %122, %126 : vector<32x128xf32>
    %128 = vector.broadcast %106 : vector<1x128xf32> to vector<32x128xf32>
    %129 = arith.mulf %127, %128 : vector<32x128xf32>
    %130 = vector.broadcast %107 : vector<1x128xf32> to vector<32x128xf32>
    %131 = arith.addf %129, %130 : vector<32x128xf32>
    %132 = arith.addf %131, %68 : vector<32x128xf32>
    %cst_38 = arith.constant 0.000000e+00 : f32
    %133 = vector.broadcast %cst_38 : f32 to vector<32x128xf32>
    %134 = arith.maximumf %132, %133 : vector<32x128xf32>
    %135 = arith.truncf %104 : vector<32x128xf32> to vector<32x128xbf16>
    %c0_39 = arith.constant 0 : index
    %c0_40 = arith.constant 0 : index
    %136 = vector.load %arg5[%c0_39, %c0_40] : memref<128x128xbf16, #tpu.memory_space<vmem>>, vector<128x128xbf16>
    %cst_41 = arith.constant dense<0.000000e+00> : vector<32x128xf32>
    %137 = tpu.matmul %135, %136, %cst_41 {dimension_numbers = #tpu.dot_dimension_numbers<[1], [0], [0], [1], [0, 0, 1, 1], [], []>} : vector<32x128xbf16>, vector<128x128xbf16>, vector<32x128xf32> -> vector<32x128xf32>
    %138 = vector.extract_strided_slice %0 {offsets = [11, 0], sizes = [1, 128], strides = [1, 1]} : vector<16x256xf32> to vector<1x128xf32>
    %139 = vector.broadcast %138 : vector<1x128xf32> to vector<32x128xf32>
    %140 = arith.addf %137, %139 : vector<32x128xf32>
    %141 = arith.truncf %134 : vector<32x128xf32> to vector<32x128xbf16>
    %142 = arith.extf %141 : vector<32x128xbf16> to vector<32x128xf32>
    %143 = vector.extract_strided_slice %0 {offsets = [12, 0], sizes = [1, 128], strides = [1, 1]} : vector<16x256xf32> to vector<1x128xf32>
    %144 = vector.broadcast %143 : vector<1x128xf32> to vector<32x128xf32>
    %145 = arith.mulf %142, %144 : vector<32x128xf32>
    %cst_42 = arith.constant dense<0.000000e+00> : vector<32xf32>
    %146 = vector.multi_reduction <add>, %145, %cst_42 [1] : vector<32x128xf32> to vector<32xf32>
    %147 = vector.shape_cast %146 : vector<32xf32> to vector<32x1xf32>
    %148 = vector.extract_strided_slice %0 {offsets = [13, 0], sizes = [1, 1], strides = [1, 1]} : vector<16x256xf32> to vector<1x1xf32>
    %149 = vector.broadcast %148 : vector<1x1xf32> to vector<32x1xf32>
    %150 = arith.addf %147, %149 : vector<32x1xf32>
    %151 = tpu.iota {dimensions = array<i32: 1>} : vector<32x128xi32>
    %c4_i32 = arith.constant 4 : i32
    %152 = vector.broadcast %c4_i32 : i32 to vector<32x128xi32>
    %153 = arith.cmpi slt, %151, %152 : vector<32x128xi32>
    %cst_43 = arith.constant -2.000000e+01 : f32
    %cst_44 = arith.constant 2.000000e+01 : f32
    %154 = vector.broadcast %cst_43 : f32 to vector<32x128xf32>
    %155 = arith.maximumf %154, %140 : vector<32x128xf32>
    %156 = vector.broadcast %cst_44 : f32 to vector<32x128xf32>
    %157 = arith.minimumf %156, %155 : vector<32x128xf32>
    %cst_45 = arith.constant -1.000000e+30 : f32
    %158 = vector.broadcast %cst_45 : f32 to vector<32x128xf32>
    %159 = arith.select %153, %157, %158 : vector<32x128xi1>, vector<32x128xf32>
    %cst_46 = arith.constant dense<0xFF800000> : vector<32xf32>
    %160 = vector.multi_reduction <maximumf>, %159, %cst_46 [1] : vector<32x128xf32> to vector<32xf32>
    %161 = vector.shape_cast %160 : vector<32xf32> to vector<32x1xf32>
    %162 = vector.broadcast %161 : vector<32x1xf32> to vector<32x128xf32>
    %163 = arith.subf %159, %162 : vector<32x128xf32>
    %164 = math.exp %163 : vector<32x128xf32>
    %cst_47 = arith.constant dense<0.000000e+00> : vector<32xf32>
    %165 = vector.multi_reduction <add>, %164, %cst_47 [1] : vector<32x128xf32> to vector<32xf32>
    %166 = vector.shape_cast %165 : vector<32xf32> to vector<32x1xf32>
    %167 = vector.broadcast %166 : vector<32x1xf32> to vector<32x128xf32>
    %168 = arith.divf %164, %167 : vector<32x128xf32>
    %c4_i32_48 = arith.constant 4 : i32
    %169 = vector.broadcast %c4_i32_48 : i32 to vector<32x128xi32>
    %170 = arith.cmpi eq, %151, %169 : vector<32x128xi32>
    %cst_49 = arith.constant 0.000000e+00 : f32
    %171 = vector.shape_cast %150 : vector<32x1xf32> to vector<32x1xf32>
    %172 = vector.broadcast %171 : vector<32x1xf32> to vector<32x128xf32>
    %173 = vector.broadcast %cst_49 : f32 to vector<32x128xf32>
    %174 = arith.select %170, %172, %173 : vector<32x128xi1>, vector<32x128xf32>
    %175 = arith.select %153, %168, %174 : vector<32x128xi1>, vector<32x128xf32>
    %176 = arith.truncf %175 : vector<32x128xf32> to vector<32x128xbf16>
    %c0_50 = arith.constant 0 : index
    %c0_51 = arith.constant 0 : index
    %177 = vector.load %arg7[%c0_50, %c0_51] : memref<32x128xbf16, #tpu.memory_space<vmem>>, vector<32x128xbf16>
    tpu.vector_store %arg7[%c0_50, %c0_51], %176 {strides = array<i32>} : memref<32x128xbf16, #tpu.memory_space<vmem>>, vector<32x128xbf16>,
    return
  }
  func.func @transform_0(%arg0: i32) -> (i32, i32) {
    %c0_i32 = arith.constant 0 : i32
    %c0_i32_0 = arith.constant 0 : i32
    return %arg0, %c0_i32 : i32, i32
  }
  func.func @transform_1(%arg0: i32) -> (i32, i32) {
    %c0_i32 = arith.constant 0 : i32
    %c0_i32_0 = arith.constant 0 : i32
    %c0_i32_1 = arith.constant 0 : i32
    return %c0_i32, %c0_i32_0 : i32, i32
  }
  func.func @transform_2(%arg0: i32) -> (i32, i32) {
    %c0_i32 = arith.constant 0 : i32
    %c0_i32_0 = arith.constant 0 : i32
    %c0_i32_1 = arith.constant 0 : i32
    return %c0_i32, %c0_i32_0 : i32, i32
  }
  func.func @transform_3(%arg0: i32) -> (i32, i32) {
    %c0_i32 = arith.constant 0 : i32
    %c0_i32_0 = arith.constant 0 : i32
    %c0_i32_1 = arith.constant 0 : i32
    return %c0_i32, %c0_i32_0 : i32, i32
  }
  func.func @transform_4(%arg0: i32) -> (i32, i32) {
    %c0_i32 = arith.constant 0 : i32
    %c0_i32_0 = arith.constant 0 : i32
    %c0_i32_1 = arith.constant 0 : i32
    return %c0_i32, %c0_i32_0 : i32, i32
  }
  func.func @transform_5(%arg0: i32) -> (i32, i32) {
    %c0_i32 = arith.constant 0 : i32
    %c0_i32_0 = arith.constant 0 : i32
    %c0_i32_1 = arith.constant 0 : i32
    return %c0_i32, %c0_i32_0 : i32, i32
  }
  func.func @transform_6(%arg0: i32) -> (i32, i32) {
    %c0_i32 = arith.constant 0 : i32
    %c0_i32_0 = arith.constant 0 : i32
    return %arg0, %c0_i32 : i32, i32
  }
}

</mosaic_0001>

<bundles_post_ra>
// kernel: tpu_custom_call.1
= control target key start
LH: loop header
LB: loop body
LE: loop exit
PB: predicated region body
PF: predicated region fallthrough
CT: control target
= control target key end

     0   :  { %11 = vsyncpa [#allocation3], 0  ;;  %s1946_s0 = inlined_call_operand.hbm [shape: bf16[32,128], index: 0, kind: input, shape index: {}]   ;;  %s1947_s1 = inlined_call_operand.hbm [shape: bf16[128,128], index: 1, kind: input, shape index: {}]   ;;  %s1948_s2 = inlined_call_operand.hbm [shape: bf16[128,128], index: 2, kind: input, shape index: {}]   ;;  %s1949_s3 = inlined_call_operand.hbm [shape: bf16[128,256], index: 3, kind: input, shape index: {}]   ;;  %s1950_s4 = inlined_call_operand.hbm [shape: bf16[128,128], index: 4, kind: input, shape index: {}]   ;;  %s1951_s5 = inlined_call_operand.hbm [shape: f32[16,256], index: 5, kind: input, shape index: {}]   ;;  %s1952_s6 = inlined_call_operand.hbm [shape: bf16[32,128], index: 6, kind: output, shape index: {}]  }
   0x1   :  { %12 = vsyncpa [#allocation6], 0 }
   0x2   :  { %13 = vsyncpa [#allocation9], 0 }
   0x3   :  { %14 = vsyncpa [#allocation12], 0 }
   0x4   :  { %15 = vsyncpa [#allocation4], 0  ;;  %s1545_s21 = smov [#allocation5]   ;;  %s1546_s23 = smov [#allocation8]  }
   0x5   :  { %s33_s22 = sshll.u32 %s1545_s21, 4  ;;  %s57_s24 = sshll.u32 %s1546_s23, 4  ;;  %s34_s22 = int_to_ptr.vmem [resolvable:$true] %s33_s22  ;;  %s1594_s24 = int_to_ptr.vmem [resolvable:$true] %s57_s24 }
   0x6   :  { %s1381_s27 = scalar_lea.hbm %s1947_s1, 1024 }
   0x7   :  { %p1382_p0 = scmp.ne.s32.totalorder %s1947_s1, %s1381_s27  ;;  %p1385_p1 = scmp.lt.u32.totalorder %s1381_s27, %s1947_s1 }
   0x9   :  { %p1387_p2 = pnand %p1385_p1, %p1382_p0 }
   0xb   :  { %1390 = shalt.err (!%p1387_p2)
}
   0xc   :  { %s1391_s8 = scalar_lea.vmem %s34_s22, 1024  ;;  %p1396_p4 = scmp.lt.s32.totalorder %s34_s22, %s34_s22 }
   0xd   :  { %p1392_p3 = scmp.ne.s32.totalorder %s34_s22, %s1391_s8  ;;  %p1397_p5 = scmp.lt.s32.totalorder %s1391_s8, %s1391_s8 }
   0xf   :  { %p1398_p6 = por %p1397_p5, %p1396_p4 }
  0x11   :  { %p1399_p7 = pnand %p1398_p6, %p1392_p3 }
  0x13   :  { %1402 = shalt.err (!%p1399_p7)
}
  0x14   :  { %s1547_s9 = smov 64   ;;  %s1548_s10 = smov 4  }
  0x15   :  { %39 = dma.hbm_to_vmem [thread:$0]  %s1947_s1, 1024, %s34_s22, [#allocation6], %s1547_s9, %s1547_s9, %s1548_s10  }
  0x16   :  { %s1403_s15 = scalar_lea.hbm %s1949_s3, 2048 }
  0x17   :  { %p1404_p8 = scmp.ne.s32.totalorder %s1949_s3, %s1403_s15  ;;  %p1407_p9 = scmp.lt.u32.totalorder %s1403_s15, %s1949_s3 }
  0x19   :  { %p1409_p10 = pnand %p1407_p9, %p1404_p8 }
  0x1b   :  { %1412 = shalt.err (!%p1409_p10)
}
  0x1c   :  { %s1413_s20 = scalar_lea.vmem %s1594_s24, 2048  ;;  %p1418_p12 = scmp.lt.s32.totalorder %s1594_s24, %s1594_s24 }
  0x1d   :  { %p1414_p11 = scmp.ne.s32.totalorder %s1594_s24, %s1413_s20  ;;  %p1419_p13 = scmp.lt.s32.totalorder %s1413_s20, %s1413_s20 }
  0x1f   :  { %p1420_p0 = por %p1419_p13, %p1418_p12 }
  0x21   :  { %p1421_p1 = pnand %p1420_p0, %p1414_p11 }
  0x23   :  { %1424 = shalt.err (!%p1421_p1)
}
  0x24   :  { %s1549_s1 = smov 128   ;;  %s1550_s21 = smov 8  }
  0x25   :  { %63 = dma.hbm_to_vmem [thread:$0]  %s1949_s3, 2048, %s1594_s24, [#allocation9], %s1549_s1, %s1549_s1, %s1550_s21  }
  0x26   :  { %s1551_s25 = smov [#allocation2]   ;;  %s1552_s27 = smov [#allocation7]  }
  0x27   :  { %s21_s26 = sshll.u32 %s1551_s25, 4  ;;  %s45_s28 = sshll.u32 %s1552_s27, 4  ;;  %s22_s26 = int_to_ptr.vmem [resolvable:$true] %s21_s26  ;;  %s1628_s28 = int_to_ptr.vmem [resolvable:$true] %s45_s28 }
  0x28   :  { %s1425_s7 = scalar_lea.hbm %s1946_s0, 256 }
  0x29   :  { %p1426_p2 = scmp.ne.s32.totalorder %s1946_s0, %s1425_s7  ;;  %p1429_p3 = scmp.lt.u32.totalorder %s1425_s7, %s1946_s0 }
  0x2b   :  { %p1431_p4 = pnand %p1429_p3, %p1426_p2 }
  0x2d   :  { %1434 = shalt.err (!%p1431_p4)
}
  0x2e   :  { %s1435_s3 = scalar_lea.vmem %s22_s26, 256  ;;  %p1440_p6 = scmp.lt.s32.totalorder %s22_s26, %s22_s26 }
  0x2f   :  { %p1436_p5 = scmp.ne.s32.totalorder %s22_s26, %s1435_s3  ;;  %p1441_p7 = scmp.lt.s32.totalorder %s1435_s3, %s1435_s3 }
  0x31   :  { %p1442_p8 = por %p1441_p7, %p1440_p6 }
  0x33   :  { %p1443_p9 = pnand %p1442_p8, %p1436_p5 }
  0x35   :  { %1446 = shalt.err (!%p1443_p9)
}
  0x36   :  { %27 = dma.hbm_to_vmem [thread:$0]  %s1946_s0, 256, %s22_s26, [#allocation3], %s1547_s9, %s1547_s9, %s1548_s10  }
  0x37   :  { %s1447_s17 = scalar_lea.hbm %s1948_s2, 1024 }
  0x38   :  { %p1448_p10 = scmp.ne.s32.totalorder %s1948_s2, %s1447_s17  ;;  %p1451_p11 = scmp.lt.u32.totalorder %s1447_s17, %s1948_s2 }
  0x3a   :  { %p1453_p12 = pnand %p1451_p11, %p1448_p10 }
  0x3c   :  { %1456 = shalt.err (!%p1453_p12)
}
  0x3d   :  { %s1457_s21 = scalar_lea.vmem %s1628_s28, 1024  ;;  %p1462_p0 = scmp.lt.s32.totalorder %s1628_s28, %s1628_s28 }
  0x3e   :  { %p1458_p13 = scmp.ne.s32.totalorder %s1628_s28, %s1457_s21  ;;  %p1463_p1 = scmp.lt.s32.totalorder %s1457_s21, %s1457_s21 }
  0x40   :  { %p1464_p2 = por %p1463_p1, %p1462_p0 }
  0x42   :  { %p1465_p3 = pnand %p1464_p2, %p1458_p13 }
  0x44   :  { %1468 = shalt.err (!%p1465_p3)
}
  0x45   :  { %51 = dma.hbm_to_vmem [thread:$0]  %s1948_s2, 1024, %s1628_s28, [#allocation6], %s1547_s9, %s1547_s9, %s1548_s10  }
  0x46   :  { %s1553_s23 = smov [#allocation10]   ;;  %s1554_s26 = smov [#allocation11]  }
  0x47   :  { %s69_s25 = sshll.u32 %s1553_s23, 4  ;;  %s81_s27 = sshll.u32 %s1554_s26, 4  ;;  %s70_s25 = int_to_ptr.vmem [resolvable:$true] %s69_s25  ;;  %s1665_s27 = int_to_ptr.vmem [resolvable:$true] %s81_s27 }
  0x48   :  { %s1469_s7 = scalar_lea.hbm %s1950_s4, 1024 }
  0x49   :  { %p1470_p4 = scmp.ne.s32.totalorder %s1950_s4, %s1469_s7  ;;  %p1473_p5 = scmp.lt.u32.totalorder %s1469_s7, %s1950_s4 }
  0x4b   :  { %p1475_p6 = pnand %p1473_p5, %p1470_p4 }
  0x4d   :  { %1478 = shalt.err (!%p1475_p6)
}
  0x4e   :  { %s1479_s2 = scalar_lea.vmem %s70_s25, 1024  ;;  %p1484_p8 = scmp.lt.s32.totalorder %s70_s25, %s70_s25 }
  0x4f   :  { %p1480_p7 = scmp.ne.s32.totalorder %s70_s25, %s1479_s2  ;;  %p1485_p9 = scmp.lt.s32.totalorder %s1479_s2, %s1479_s2 }
  0x51   :  { %p1486_p10 = por %p1485_p9, %p1484_p8 }
  0x53   :  { %p1487_p11 = pnand %p1486_p10, %p1480_p7 }
  0x55   :  { %1490 = shalt.err (!%p1487_p11)
}
  0x56   :  { %75 = dma.hbm_to_vmem [thread:$0]  %s1950_s4, 1024, %s70_s25, [#allocation9], %s1547_s9, %s1547_s9, %s1548_s10  }
  0x57   :  { %s1491_s15 = scalar_lea.hbm %s1951_s5, 512 }
  0x58   :  { %p1492_p12 = scmp.ne.s32.totalorder %s1951_s5, %s1491_s15  ;;  %p1495_p13 = scmp.lt.u32.totalorder %s1491_s15, %s1951_s5 }
  0x5a   :  { %p1497_p0 = pnand %p1495_p13, %p1492_p12 }
  0x5c   :  { %1500 = shalt.err (!%p1497_p0)
}
  0x5d   :  { %s1501_s20 = scalar_lea.vmem %s1665_s27, 512  ;;  %p1506_p2 = scmp.lt.s32.totalorder %s1665_s27, %s1665_s27 }
  0x5e   :  { %p1502_p1 = scmp.ne.s32.totalorder %s1665_s27, %s1501_s20  ;;  %p1507_p3 = scmp.lt.s32.totalorder %s1501_s20, %s1501_s20 }
  0x60   :  { %p1508_p4 = por %p1507_p3, %p1506_p2 }
  0x62   :  { %p1509_p5 = pnand %p1508_p4, %p1502_p1 }
  0x64   :  { %1512 = shalt.err (!%p1509_p5)
}
  0x65   :  { %s1555_s4 = smov 256   ;;  %s1556_s1 = smov 16  }
  0x66   :  { %87 = dma.hbm_to_vmem [thread:$0]  %s1951_s5, 512, %s1665_s27, [#allocation12], %s1555_s4, %s1555_s4, %s1556_s1  }
  0x67   :  { %1535 = dma.done.wait [#allocation3], 256  }
  0x68   :  { %1536 = vsyncadd [#allocation3], 4294967040 }
  0x69   :  { %1537 = dma.done.wait [#allocation6], 2048  }
  0x6a   :  { %1538 = vsyncadd [#allocation6], 4294965248 }
  0x6b   :  { %1539 = dma.done.wait [#allocation9], 3072  }
  0x6c   :  { %1540 = vsyncadd [#allocation9], 4294964224 }
  0x6d   :  { %1541 = dma.done.wait [#allocation12], 512  }
  0x6e   :  { %1542 = vsyncadd [#allocation12], 4294966784  ;;  %v1283_v0 = vld [vmem:[#allocation5] sm:$0xff]   ;;  %v1284_v1 = vld [vmem:[#allocation5 + $0x8] sm:$0xff]   ;;  %v130_v10 = vlaneseq  ;;  %s1558_s5 = smov [#allocation13]  }
  0x6f   :  { %1197 = vmatprep.subr.bf16.mxu0 %v1283_v0  ;;  %v1285_v2 = vld [vmem:[#allocation5 + $0x10] sm:$0xff]   ;;  %v1286_v3 = vld [vmem:[#allocation5 + $0x18] sm:$0xff]   ;;  %v1287_v5 = vld [vmem:[#allocation5 + $0x20] sm:$0xff]   ;;  %s1087_s22 = sshll.u32 %s1558_s5, 4  ;;  %s1088_s22 = int_to_ptr.vmem [resolvable:$true] %s1087_s22 }
  0x70   :  { %1198 = vmatpush3.bf16.msra.mxu0 %v1283_v0  ;;  %v1291_v4 = vld [vmem:[#allocation2] sm:$0xff]   ;;  %v1288_v6 = vld [vmem:[#allocation5 + $0x28] sm:$0xff]   ;;  %v1290_v8 = vld [vmem:[#allocation5 + $0x38] sm:$0xff]   ;;  %v1700_v11 = vshrl.u32 %v130_v10, 7  ;;  %s1513_s23 = scalar_lea.vmem %s1088_s22, 256  ;;  %p1518_p7 = scmp.lt.s32.totalorder %s1088_s22, %s1088_s22 }
  0x71   :  { %1199 = vmatprep.subr.bf16.mxu0 %v1284_v1  ;;  %1213 = vmatprep.mubr.bf16.mxu0 %v1291_v4  ;;  %v1289_v7 = vld [vmem:[#allocation5 + $0x30] sm:$0xff]   ;;  %v1292_v9 = vld [vmem:[#allocation2 + $0x8] sm:$0xff]   ;;  %v1703_v13 = vld [vmem:[#allocation11] sm:$0xff]  ;;  %p1514_p6 = scmp.ne.s32.totalorder %s1088_s22, %s1513_s23  ;;  %p1519_p8 = scmp.lt.s32.totalorder %s1513_s23, %s1513_s23 }
  0x72   :  { %v132_v12 = vsub.s32 0, %v1700_v11  ;;  %v1293_v27 = vld [vmem:[#allocation7] sm:$0xff]   ;;  %v1294_v28 = vld [vmem:[#allocation7 + $0x8] sm:$0xff]   ;;  %v1295_v29 = vld [vmem:[#allocation7 + $0x10] sm:$0xff]   ;;  %v309_v4 = vsub.s32 2, %v1700_v11 }
  0x73   :  { %1217 = vmatprep.subr.bf16.mxu1 %v1293_v27  ;;  %v1296_v30 = vld [vmem:[#allocation7 + $0x18] sm:$0xff]   ;;  %v1297_v31 = vld [vmem:[#allocation7 + $0x20] sm:$0xff]   ;;  %v1298_v32 = vld [vmem:[#allocation7 + $0x28] sm:$0xff]   ;;  %p1520_p9 = por %p1519_p8, %p1518_p7 }
  0x74   :  { %1200 = vmatpush3.bf16.msra.mxu0 %v1284_v1  ;;  %v133_v14 = vrot.slane %v1703_v13, %v132_v12  ;;  %1218 = vmatpush3.bf16.msra.mxu1 %v1293_v27  ;;  %v1299_v33 = vld [vmem:[#allocation7 + $0x30] sm:$0xff]   ;;  %v1300_v34 = vld [vmem:[#allocation7 + $0x38] sm:$0xff]  }
  0x75   :  { %1201 = vmatprep.subr.bf16.mxu0 %v1285_v2  ;;  %1219 = vmatprep.subr.bf16.mxu1 %v1294_v28  ;;  %p1521_p10 = pnand %p1520_p9, %p1514_p6 }
  0x78   :  { %1202 = vmatpush3.bf16.msra.mxu0 %v1285_v2  ;;  %1220 = vmatpush3.bf16.msra.mxu1 %v1294_v28 }
  0x79   :  { %1203 = vmatprep.subr.bf16.mxu0 %v1286_v3  ;;  %1221 = vmatprep.subr.bf16.mxu1 %v1295_v29 }
  0x7c   :  { %1204 = vmatpush3.bf16.msra.mxu0 %v1286_v3  ;;  %1222 = vmatpush3.bf16.msra.mxu1 %v1295_v29  ;;  %v301_v3 = vsub.s32 1, %v1700_v11 }
  0x7d   :  { %1205 = vmatprep.subr.bf16.mxu0 %v1287_v5  ;;  %1223 = vmatprep.subr.bf16.mxu1 %v1296_v30 }
  0x80   :  { %1206 = vmatpush3.bf16.msra.mxu0 %v1287_v5  ;;  %1224 = vmatpush3.bf16.msra.mxu1 %v1296_v30 }
  0x81   :  { %1207 = vmatprep.subr.bf16.mxu0 %v1288_v6  ;;  %1225 = vmatprep.subr.bf16.mxu1 %v1297_v31 }
  0x84   :  { %1208 = vmatpush3.bf16.msra.mxu0 %v1288_v6  ;;  %1226 = vmatpush3.bf16.msra.mxu1 %v1297_v31  ;;  %v302_v6 = vrot.slane %v1703_v13, %v301_v3 }
  0x85   :  { %1209 = vmatprep.subr.bf16.mxu0 %v1289_v7  ;;  %1227 = vmatprep.subr.bf16.mxu1 %v1298_v32 }
  0x88   :  { %1210 = vmatpush3.bf16.msra.mxu0 %v1289_v7  ;;  %1228 = vmatpush3.bf16.msra.mxu1 %v1298_v32 }
  0x89   :  { %1211 = vmatprep.subr.bf16.mxu0 %v1290_v8  ;;  %1229 = vmatprep.subr.bf16.mxu1 %v1299_v33 }
  0x8c   :  { %1212 = vmatpush3.bf16.msra.mxu0 %v1290_v8  ;;  %1230 = vmatpush3.bf16.msra.mxu1 %v1299_v33 }
  0x8d   :  { %1231 = vmatprep.subr.bf16.mxu1 %v1300_v34 }
  0x8f   :  { %1214 = vmatmul.mubr.bf16.vlgmr.msra.gmra.mrb[0].mxu0 %v1292_v9 }
  0x90   :  { %1232 = vmatpush3.bf16.msra.mxu1 %v1300_v34 }
 0x162   :  { %v1215_v15 = vpop.f32.mrb[0].mxu0 }
 0x163   :  { %v1708_v16 = vadd.f32 %v1215_v15, %v133_v14  ;;  %v228_v17 = vpop.f32.mrb[1].mxu0  ;;  %v310_v15 = vrot.slane %v1703_v13, %v309_v4 }
 0x164   :  { %v1710_v18 = vadd.f32 %v228_v17, %v133_v14  ;;  %v1216_v19 = vpop.f32.mrb[2].mxu0 }
 0x165   :  { %v231_v20 = vpop.f32.mrb[3].mxu0  ;;  %247 = vadd.xlane.f32.xlu1 %v1708_v16  ;;  %v1714_v21 = vadd.f32 %v1216_v19, %v133_v14  ;;  %v257_v26 = vmul.f32 %v1708_v16, %v1708_v16 }
 0x166   :  { %243 = vadd.xlane.f32.xlu0 %v1710_v18  ;;  %v1716_v22 = vadd.f32 %v231_v20, %v133_v14  ;;  %v255_v24 = vmul.f32 %v1710_v18, %v1710_v18 }
 0x167   :  { %v258_v25 = vmul.f32 %v1714_v21, %v1714_v21 }
 0x168   :  { %v256_v23 = vmul.f32 %v1716_v22, %v1716_v22 }
 0x169   :  { %249 = vadd.xlane.f32.xlu1 %v1714_v21 }
 0x16a   :  { %245 = vadd.xlane.f32.xlu0 %v1716_v22 }
 0x16d   :  { %261 = vadd.xlane.f32.xlu1 %v256_v23 }
 0x16e   :  { %259 = vadd.xlane.f32.xlu0 %v255_v24 }
 0x171   :  { %265 = vadd.xlane.f32.xlu1 %v258_v25 }
 0x172   :  { %263 = vadd.xlane.f32.xlu0 %v257_v26 }
 0x1f2   :  { %v248_v35 = vpop.xlane.xlu1 %247 }
 0x1f3   :  { %v244_v36 = vpop.xlane.xlu0 %243  ;;  %v253_v46 = vmul.f32 0.0078125, %v248_v35 }
 0x1f4   :  { %v251_v39 = vmul.f32 0.0078125, %v244_v36 }
 0x1f5   :  { %v273_v56 = vmul.f32 %v253_v46, %v253_v46 }
 0x1f6   :  { %v250_v37 = vpop.xlane.xlu1 %249  ;;  %v271_v47 = vmul.f32 %v251_v39, %v251_v39  ;;  %v283_v8 = vsub.f32 %v1710_v18, %v251_v39 }
 0x1f7   :  { %v246_v38 = vpop.xlane.xlu0 %245  ;;  %v254_v43 = vmul.f32 0.0078125, %v250_v37 }
 0x1f8   :  { %v252_v40 = vmul.f32 0.0078125, %v246_v38 }
 0x1f9   :  { %v274_v52 = vmul.f32 %v254_v43, %v254_v43  ;;  %v286_v19 = vsub.f32 %v1714_v21, %v254_v43 }
 0x1fa   :  { %v272_v41 = vmul.f32 %v252_v40, %v252_v40  ;;  %v262_v42 = vpop.xlane.xlu1 %261  ;;  %v284_v5 = vsub.f32 %v1716_v22, %v252_v40  ;;  %v285_v22 = vsub.f32 %v1708_v16, %v253_v46  ;;  %v339_v16 = vsub.s32 3, %v1700_v11 }
 0x1fb   :  { %v268_v44 = vmul.f32 0.0078125, %v262_v42  ;;  %v260_v45 = vpop.xlane.xlu0 %259 }
 0x1fc   :  { %v267_v48 = vmul.f32 0.0078125, %v260_v45  ;;  %v340_v38 = vrot.slane %v1703_v13, %v339_v16 }
 0x1fd   :  { %v276_v49 = vsub.f32 %v268_v44, %v272_v41 }
 0x1fe   :  { %v275_v50 = vsub.f32 %v267_v48, %v271_v47  ;;  %v266_v51 = vpop.xlane.xlu1 %265 }
 0x1ff   :  { %v280_v53 = vmax.f32 %v276_v49, 0.0  ;;  %v270_v54 = vmul.f32 0.0078125, %v266_v51  ;;  %v264_v55 = vpop.xlane.xlu0 %263  ;;  %v1303_v51 = vld [vmem:[#allocation8 + $0x4] ss:$8 sps:$4 sm:$0xff]  }
 0x200   :  { %v279_v57 = vmax.f32 %v275_v50, 0.0  ;;  %v269_v58 = vmul.f32 0.0078125, %v264_v55  ;;  %620 = vmatprep.subr.bf16.mxu0 %v1303_v51  ;;  %v1309_v55 = vld [vmem:[#allocation8 + $0x24] ss:$8 sps:$4 sm:$0xff]  }
 0x201   :  { %v288_v59 = vadd.f32 1e-05, %v280_v53  ;;  %v278_v60 = vsub.f32 %v270_v54, %v274_v52  ;;  %v1301_v52 = vld [vmem:[#allocation8] ss:$8 sps:$4 sm:$0xff]   ;;  %v1306_v53 = vld [vmem:[#allocation8 + $0x14] ss:$8 sps:$4 sm:$0xff]  }
 0x202   :  { %v287_v61 = vadd.f32 1e-05, %v279_v57  ;;  %v277_v62 = vsub.f32 %v269_v58, %v273_v56  ;;  %621 = vmatpush1.bf16.msra.mxu0 %v1301_v52  ;;  %v1304_v54 = vld [vmem:[#allocation8 + $0x10] ss:$8 sps:$4 sm:$0xff]   ;;  %v1307_v56 = vld [vmem:[#allocation8 + $0x20] ss:$8 sps:$4 sm:$0xff]  }
 0x203   :  { %1333 = vrsqrt.f32 %v288_v59  ;;  %v282_v63 = vmax.f32 %v278_v60, 0.0  ;;  %622 = vmatprep.subr.bf16.mxu0 %v1306_v53  ;;  %v1312_v57 = vld [vmem:[#allocation8 + $0x34] ss:$8 sps:$4 sm:$0xff]   ;;  %v1310_v58 = vld [vmem:[#allocation8 + $0x30] ss:$8 sps:$4 sm:$0xff]  }
 0x204   :  { %1335 = vrsqrt.f32 %v287_v61  ;;  %v281_v0 = vmax.f32 %v277_v62, 0.0  ;;  %v1315_v59 = vld [vmem:[#allocation8 + $0x44] ss:$8 sps:$4 sm:$0xff]   ;;  %v1313_v60 = vld [vmem:[#allocation8 + $0x40] ss:$8 sps:$4 sm:$0xff]  }
 0x205   :  { %v290_v1 = vadd.f32 1e-05, %v282_v63  ;;  %v1318_v61 = vld [vmem:[#allocation8 + $0x54] ss:$8 sps:$4 sm:$0xff]   ;;  %v1316_v62 = vld [vmem:[#allocation8 + $0x50] ss:$8 sps:$4 sm:$0xff]  }
 0x206   :  { %v289_v2 = vadd.f32 1e-05, %v281_v0  ;;  %623 = vmatpush1.bf16.msra.mxu0 %v1304_v54  ;;  %v1319_v63 = vld [vmem:[#allocation8 + $0x60] ss:$8 sps:$4 sm:$0xff]   ;;  %v1321_v0 = vld [vmem:[#allocation8 + $0x64] ss:$8 sps:$4 sm:$0xff]  }
 0x207   :  { %1337 = vrsqrt.f32 %v290_v1  ;;  %624 = vmatprep.subr.bf16.mxu0 %v1309_v55  ;;  %v1324_v1 = vld [vmem:[#allocation8 + $0x74] ss:$8 sps:$4 sm:$0xff]  }
 0x208   :  { %1339 = vrsqrt.f32 %v289_v2  ;;  %v1557_v2 = vmov 0  }
 0x209   :  { %652 = vmatprep.mubr.bf16.mxu0 %v1557_v2  ;;  %1277 = vset.pattern.permute.xlu1 %v1557_v2 }
 0x20a   :  { %625 = vmatpush1.bf16.msra.mxu0 %v1307_v56  ;;  %1271 = vset.pattern.permute.xlu0 %v1557_v2 }
 0x20b   :  { %626 = vmatprep.subr.bf16.mxu0 %v1312_v57 }
 0x20d   :  { %v1334_v7 = vpop.eup %1333 }
 0x20e   :  { %v1336_v9 = vpop.eup %1335  ;;  %v296_v14 = vmul.f32 %v1334_v7, %v284_v5  ;;  %627 = vmatpush1.bf16.msra.mxu0 %v1310_v58  ;;  %v1322_v5 = vld [vmem:[#allocation8 + $0x70] ss:$8 sps:$4 sm:$0xff]  }
 0x20f   :  { %v295_v17 = vmul.f32 %v1336_v9, %v283_v8  ;;  %628 = vmatprep.subr.bf16.mxu0 %v1315_v59 }
 0x210   :  { %v304_v20 = vmul.f32 %v302_v6, %v296_v14 }
 0x211   :  { %v1338_v23 = vpop.eup %1337  ;;  %v303_v24 = vmul.f32 %v302_v6, %v295_v17 }
 0x212   :  { %v1340_v25 = vpop.eup %1339  ;;  %v312_v26 = vadd.f32 %v310_v15, %v304_v20  ;;  %v298_v27 = vmul.f32 %v1338_v23, %v286_v19  ;;  %629 = vmatpush1.bf16.msra.mxu0 %v1313_v60 }
 0x213   :  { %v311_v28 = vadd.f32 %v310_v15, %v303_v24  ;;  %v297_v29 = vmul.f32 %v1340_v25, %v285_v22  ;;  %630 = vmatprep.subr.bf16.mxu0 %v1318_v61 }
 0x214   :  { %v316_v18 = vmax.f32 %v312_v26, 0.0  ;;  %v306_v30 = vmul.f32 %v302_v6, %v298_v27 }
 0x215   :  { %v315_v31 = vmax.f32 %v311_v28, 0.0  ;;  %v305_v32 = vmul.f32 %v302_v6, %v297_v29 }
 0x216   :  { %v314_v33 = vadd.f32 %v310_v15, %v306_v30  ;;  %631 = vmatpush1.bf16.msra.mxu0 %v1316_v62 }
 0x217   :  { %v319_v34 = vpack.c.bf16 %v316_v18, %v315_v31  ;;  %v313_v35 = vadd.f32 %v310_v15, %v305_v32  ;;  %632 = vmatprep.subr.bf16.mxu0 %v1321_v0 }
 0x218   :  { %v318_v36 = vmax.f32 %v314_v33, 0.0 }
 0x219   :  { %1233 = vmatprep.mubr.bf16.mxu1 %v319_v34  ;;  %v317_v21 = vmax.f32 %v313_v35, 0.0 }
 0x21a   :  { %633 = vmatpush1.bf16.msra.mxu0 %v1319_v63 }
 0x21b   :  { %v320_v37 = vpack.c.bf16 %v318_v36, %v317_v21  ;;  %634 = vmatprep.subr.bf16.mxu0 %v1324_v1 }
 0x21d   :  { %1234 = vmatmul.mubr.bf16.vlgmr.msra.gmra.mrb[0].mxu1 %v320_v37 }
 0x21e   :  { %635 = vmatpush1.bf16.msra.mxu0 %v1322_v5 }
 0x2f0   :  { %v1235_v39 = vpop.f32.mrb[0].mxu1 }
 0x2f1   :  { %v423_v40 = vpop.f32.mrb[1].mxu1  ;;  %v1754_v47 = vadd.f32 %v1235_v39, %v340_v38 }
 0x2f2   :  { %v1744_v41 = vadd.f32 %v423_v40, %v340_v38  ;;  %v1236_v42 = vpop.f32.mrb[2].mxu1  ;;  %v496_v40 = vsub.s32 4, %v1700_v11 }
 0x2f3   :  { %v426_v43 = vpop.f32.mrb[3].mxu1  ;;  %v1756_v48 = vadd.f32 %v1236_v42, %v340_v38  ;;  %v452_v49 = vmul.f32 %v1754_v47, %v1754_v47 }
 0x2f4   :  { %v1746_v44 = vadd.f32 %v426_v43, %v340_v38  ;;  %438 = vadd.xlane.f32.xlu0 %v1744_v41  ;;  %v450_v45 = vmul.f32 %v1744_v41, %v1744_v41 }
 0x2f5   :  { %v453_v50 = vmul.f32 %v1756_v48, %v1756_v48 }
 0x2f6   :  { %440 = vadd.xlane.f32.xlu1 %v1746_v44  ;;  %v451_v46 = vmul.f32 %v1746_v44, %v1746_v44 }
 0x2f8   :  { %454 = vadd.xlane.f32.xlu0 %v450_v45  ;;  %v504_v45 = vsub.s32 5, %v1700_v11 }
 0x2fa   :  { %456 = vadd.xlane.f32.xlu1 %v451_v46  ;;  %v505_v54 = vrot.slane %v1703_v13, %v504_v45 }
 0x2fc   :  { %442 = vadd.xlane.f32.xlu0 %v1754_v47 }
 0x2fe   :  { %444 = vadd.xlane.f32.xlu1 %v1756_v48 }
 0x300   :  { %458 = vadd.xlane.f32.xlu0 %v452_v49 }
 0x302   :  { %460 = vadd.xlane.f32.xlu1 %v453_v50  ;;  %v497_v50 = vrot.slane %v1703_v13, %v496_v40 }
 0x381   :  { %v439_v6 = vpop.xlane.xlu0 %438 }
 0x382   :  { %v446_v7 = vmul.f32 0.0078125, %v439_v6 }
 0x383   :  { %v441_v8 = vpop.xlane.xlu1 %440 }
 0x384   :  { %v447_v9 = vmul.f32 0.0078125, %v441_v8  ;;  %v466_v15 = vmul.f32 %v446_v7, %v446_v7  ;;  %v478_v49 = vsub.f32 %v1744_v41, %v446_v7 }
 0x385   :  { %v455_v14 = vpop.xlane.xlu0 %454 }
 0x386   :  { %v462_v17 = vmul.f32 0.0078125, %v455_v14  ;;  %v467_v20 = vmul.f32 %v447_v9, %v447_v9  ;;  %v479_v52 = vsub.f32 %v1746_v44, %v447_v9 }
 0x387   :  { %v457_v19 = vpop.xlane.xlu1 %456 }
 0x388   :  { %v470_v23 = vsub.f32 %v462_v17, %v466_v15  ;;  %v463_v22 = vmul.f32 0.0078125, %v457_v19  ;;  %v534_v17 = vsub.s32 6, %v1700_v11 }
 0x389   :  { %v443_v24 = vpop.xlane.xlu0 %442 }
 0x38a   :  { %v474_v25 = vmax.f32 %v470_v23, 0.0  ;;  %v471_v26 = vsub.f32 %v463_v22, %v467_v20  ;;  %v448_v27 = vmul.f32 0.0078125, %v443_v24  ;;  %v535_v19 = vrot.slane %v1703_v13, %v534_v17 }
 0x38b   :  { %v445_v28 = vpop.xlane.xlu1 %444 }
 0x38c   :  { %v482_v29 = vadd.f32 1e-05, %v474_v25  ;;  %v475_v18 = vmax.f32 %v471_v26, 0.0  ;;  %v449_v30 = vmul.f32 0.0078125, %v445_v28  ;;  %v468_v33 = vmul.f32 %v448_v27, %v448_v27 }
 0x38d   :  { %v459_v31 = vpop.xlane.xlu0 %458  ;;  %v480_v41 = vsub.f32 %v1754_v47, %v448_v27 }
 0x38e   :  { %1341 = vrsqrt.f32 %v482_v29  ;;  %v483_v32 = vadd.f32 1e-05, %v475_v18  ;;  %v464_v34 = vmul.f32 0.0078125, %v459_v31  ;;  %v469_v36 = vmul.f32 %v449_v30, %v449_v30 }
 0x38f   :  { %v461_v35 = vpop.xlane.xlu1 %460  ;;  %v481_v62 = vsub.f32 %v1756_v48, %v449_v30  ;;  %v108_v30 = vld [vmem:[#allocation11 + $0x8] sm:$0xff] }
 0x390   :  { %1343 = vrsqrt.f32 %v483_v32  ;;  %v472_v21 = vsub.f32 %v464_v34, %v468_v33  ;;  %v465_v37 = vmul.f32 0.0078125, %v461_v35  ;;  %v539_v34 = vrot.slane %v108_v30, %v534_v17 }
 0x392   :  { %v476_v38 = vmax.f32 %v472_v21, 0.0  ;;  %v473_v39 = vsub.f32 %v465_v37, %v469_v36 }
 0x394   :  { %v484_v42 = vadd.f32 1e-05, %v476_v38  ;;  %v477_v43 = vmax.f32 %v473_v39, 0.0 }
 0x396   :  { %1345 = vrsqrt.f32 %v484_v42  ;;  %v485_v46 = vadd.f32 1e-05, %v477_v43 }
 0x398   :  { %v1342_v51 = vpop.eup %1341  ;;  %1347 = vrsqrt.f32 %v485_v46 }
 0x399   :  { %v490_v53 = vmul.f32 %v1342_v51, %v478_v49  ;;  %v1325_v49 = vld [vmem:[#allocation10] sm:$0xff]   ;;  %v1326_v51 = vld [vmem:[#allocation10 + $0x8] sm:$0xff]  }
 0x39a   :  { %v1344_v55 = vpop.eup %1343  ;;  %1237 = vmatprep.subr.bf16.mxu1 %v1325_v49 }
 0x39b   :  { %v491_v56 = vmul.f32 %v1344_v55, %v479_v52  ;;  %v498_v57 = vmul.f32 %v497_v50, %v490_v53  ;;  %1238 = vmatpush3.bf16.msra.mxu1 %v1325_v49  ;;  %v1327_v52 = vld [vmem:[#allocation10 + $0x10] sm:$0xff]   ;;  %v1328_v53 = vld [vmem:[#allocation10 + $0x18] sm:$0xff]   ;;  %v1330_v55 = vld [vmem:[#allocation10 + $0x28] sm:$0xff]  }
 0x39c   :  { %1239 = vmatprep.subr.bf16.mxu1 %v1326_v51 }
 0x39d   :  { %v499_v58 = vmul.f32 %v497_v50, %v491_v56  ;;  %v506_v59 = vadd.f32 %v505_v54, %v498_v57  ;;  %v1331_v56 = vld [vmem:[#allocation10 + $0x30] sm:$0xff]   ;;  %v1332_v57 = vld [vmem:[#allocation10 + $0x38] sm:$0xff]  }
 0x39f   :  { %v507_v60 = vadd.f32 %v505_v54, %v499_v58  ;;  %v1779_v63 = vmax.f32 %v506_v59, 0.0  ;;  %1240 = vmatpush3.bf16.msra.mxu1 %v1326_v51 }
 0x3a0   :  { %v1346_v61 = vpop.eup %1345  ;;  %1241 = vmatprep.subr.bf16.mxu1 %v1327_v52 }
 0x3a1   :  { %v1781_v0 = vmax.f32 %v507_v60, 0.0  ;;  %v492_v44 = vmul.f32 %v1346_v61, %v480_v41 }
 0x3a2   :  { %v1348_v1 = vpop.eup %1347 }
 0x3a3   :  { %v514_v5 = vpack.c.bf16 %v1781_v0, %v1779_v63  ;;  %v493_v6 = vmul.f32 %v1348_v1, %v481_v62  ;;  %v500_v7 = vmul.f32 %v497_v50, %v492_v44  ;;  %1242 = vmatpush3.bf16.msra.mxu1 %v1327_v52 }
 0x3a4   :  { %1243 = vmatprep.subr.bf16.mxu1 %v1328_v53 }
 0x3a5   :  { %653 = vmatmul.mubr.bf16.vlgmr.msra.gmra.mrb[4].mxu0 %v514_v5  ;;  %v501_v8 = vmul.f32 %v497_v50, %v493_v6  ;;  %v508_v9 = vadd.f32 %v505_v54, %v500_v7 }
 0x3a6   :  { %662 = vmatprep.mubr.bf16.mxu0 %v1557_v2 }
 0x3a7   :  { %v509_v47 = vadd.f32 %v505_v54, %v501_v8  ;;  %v1786_v14 = vmax.f32 %v508_v9, 0.0  ;;  %1244 = vmatpush3.bf16.msra.mxu1 %v1328_v53  ;;  %v1329_v54 = vld [vmem:[#allocation10 + $0x20] sm:$0xff]  }
 0x3a8   :  { %1245 = vmatprep.subr.bf16.mxu1 %v1329_v54 }
 0x3a9   :  { %v1788_v48 = vmax.f32 %v509_v47, 0.0 }
 0x3ab   :  { %v515_v15 = vpack.c.bf16 %v1788_v48, %v1786_v14  ;;  %1246 = vmatpush3.bf16.msra.mxu1 %v1329_v54 }
 0x3ac   :  { %1247 = vmatprep.subr.bf16.mxu1 %v1330_v55 }
 0x3ad   :  { %663 = vmatmul.mubr.bf16.gmra.mrb[8].mxu0 %v515_v15 }
 0x3af   :  { %1248 = vmatpush3.bf16.msra.mxu1 %v1330_v55 }
 0x3b0   :  { %1249 = vmatprep.subr.bf16.mxu1 %v1331_v56 }
 0x3b3   :  { %1250 = vmatpush3.bf16.msra.mxu1 %v1331_v56 }
 0x3b4   :  { %1251 = vmatprep.subr.bf16.mxu1 %v1332_v57 }
 0x3b7   :  { %1252 = vmatpush3.bf16.msra.mxu1 %v1332_v57 }
 0x478   :  { %v654_v20 = vpop.f32.mrb[4].mxu0 }
 0x479   :  { %v1794_v23 = vadd.f32 %v654_v20, %v535_v19  ;;  %v656_v22 = vpop.f32.mrb[5].mxu0 }
 0x47a   :  { %v658_v24 = vpop.f32.mrb[6].mxu0  ;;  %v1814_v21 = vadd.f32 %v656_v22, %v539_v34 }
 0x47b   :  { %v1796_v25 = vadd.f32 %v658_v24, %v535_v19  ;;  %v660_v2 = vpop.f32.mrb[7].mxu0  ;;  %673 = vadd.xlane.f32.xlu0 %v1794_v23  ;;  %v685_v26 = vmul.f32 %v1794_v23, %v1794_v23 }
 0x47c   :  { %v1816_v37 = vadd.f32 %v660_v2, %v539_v34  ;;  %v765_v42 = vmul.f32 %v1814_v21, %v1814_v21 }
 0x47d   :  { %675 = vadd.xlane.f32.xlu1 %v1796_v25  ;;  %v686_v27 = vmul.f32 %v1796_v25, %v1796_v25 }
 0x47e   :  { %v766_v43 = vmul.f32 %v1816_v37, %v1816_v37 }
 0x47f   :  { %689 = vadd.xlane.f32.xlu0 %v685_v26 }
 0x480   :  { %v664_v28 = vpop.f32.mrb[8].mxu0 }
 0x481   :  { %v1804_v29 = vadd.f32 %v664_v28, %v535_v19  ;;  %691 = vadd.xlane.f32.xlu1 %v686_v27  ;;  %v666_v18 = vpop.f32.mrb[9].mxu0 }
 0x482   :  { %v668_v31 = vpop.f32.mrb[10].mxu0  ;;  %v1819_v38 = vadd.f32 %v666_v18, %v539_v34 }
 0x483   :  { %v1806_v32 = vadd.f32 %v668_v31, %v535_v19  ;;  %v670_v33 = vpop.f32.mrb[11].mxu0  ;;  %677 = vadd.xlane.f32.xlu0 %v1804_v29  ;;  %v687_v35 = vmul.f32 %v1804_v29, %v1804_v29 }
 0x484   :  { %v1822_v39 = vadd.f32 %v670_v33, %v539_v34  ;;  %v767_v46 = vmul.f32 %v1819_v38, %v1819_v38 }
 0x485   :  { %679 = vadd.xlane.f32.xlu1 %v1806_v32  ;;  %v688_v36 = vmul.f32 %v1806_v32, %v1806_v32 }
 0x486   :  { %v768_v50 = vmul.f32 %v1822_v39, %v1822_v39 }
 0x487   :  { %693 = vadd.xlane.f32.xlu0 %v687_v35 }
 0x489   :  { %695 = vadd.xlane.f32.xlu1 %v688_v36 }
 0x48b   :  { %753 = vadd.xlane.f32.xlu0 %v1814_v21 }
 0x48d   :  { %755 = vadd.xlane.f32.xlu1 %v1816_v37 }
 0x48f   :  { %757 = vadd.xlane.f32.xlu0 %v1819_v38 }
 0x491   :  { %759 = vadd.xlane.f32.xlu1 %v1822_v39 }
 0x493   :  { %769 = vadd.xlane.f32.xlu0 %v765_v42  ;;  %v731_v42 = vsub.s32 7, %v1700_v11 }
 0x495   :  { %771 = vadd.xlane.f32.xlu1 %v766_v43  ;;  %v732_v55 = vrot.slane %v1703_v13, %v731_v42 }
 0x497   :  { %773 = vadd.xlane.f32.xlu0 %v767_v46 }
 0x499   :  { %775 = vadd.xlane.f32.xlu1 %v768_v50  ;;  %v1843_v50 = vld [vmem:[#allocation11 + $0x10] sm:$0xff] }
 0x508   :  { %v674_v58 = vpop.xlane.xlu0 %673 }
 0x509   :  { %v681_v59 = vmul.f32 0.0078125, %v674_v58  ;;  %v740_v58 = vrot.slane %v1843_v50, %v132_v12 }
 0x50a   :  { %v676_v41 = vpop.xlane.xlu1 %675 }
 0x50b   :  { %v682_v60 = vmul.f32 0.0078125, %v676_v41  ;;  %v701_v62 = vmul.f32 %v681_v59, %v681_v59  ;;  %v713_v53 = vsub.f32 %v1794_v23, %v681_v59 }
 0x50c   :  { %v690_v61 = vpop.xlane.xlu0 %689 }
 0x50d   :  { %v697_v44 = vmul.f32 0.0078125, %v690_v61  ;;  %v702_v5 = vmul.f32 %v682_v60, %v682_v60  ;;  %v714_v41 = vsub.f32 %v1796_v25, %v682_v60 }
 0x50e   :  { %v692_v1 = vpop.xlane.xlu1 %691 }
 0x50f   :  { %v705_v6 = vsub.f32 %v697_v44, %v701_v62  ;;  %v698_v7 = vmul.f32 0.0078125, %v692_v1 }
 0x510   :  { %v678_v8 = vpop.xlane.xlu0 %677 }
 0x511   :  { %v709_v9 = vmax.f32 %v705_v6, 0.0  ;;  %v706_v47 = vsub.f32 %v698_v7, %v702_v5  ;;  %v1834_v15 = vmul.f32 0.0078125, %v678_v8 }
 0x512   :  { %v680_v17 = vpop.xlane.xlu1 %679 }
 0x513   :  { %v717_v19 = vadd.f32 1e-05, %v709_v9  ;;  %v710_v20 = vmax.f32 %v706_v47, 0.0  ;;  %v1836_v22 = vmul.f32 0.0078125, %v680_v17  ;;  %v703_v26 = vmul.f32 %v1834_v15, %v1834_v15 }
 0x514   :  { %v694_v24 = vpop.xlane.xlu0 %693 }
 0x515   :  { %1349 = vrsqrt.f32 %v717_v19  ;;  %v718_v2 = vadd.f32 1e-05, %v710_v20  ;;  %v699_v27 = vmul.f32 0.0078125, %v694_v24  ;;  %v704_v18 = vmul.f32 %v1836_v22, %v1836_v22 }
 0x516   :  { %v696_v28 = vpop.xlane.xlu1 %695 }
 0x517   :  { %1351 = vrsqrt.f32 %v718_v2  ;;  %v707_v30 = vsub.f32 %v699_v27, %v703_v26  ;;  %v700_v31 = vmul.f32 0.0078125, %v696_v28  ;;  %v715_v2 = vsub.f32 %v1804_v29, %v1834_v15 }
 0x518   :  { %v754_v33 = vpop.xlane.xlu0 %753 }
 0x519   :  { %v711_v34 = vmax.f32 %v707_v30, 0.0  ;;  %v708_v35 = vsub.f32 %v700_v31, %v704_v18  ;;  %v1845_v52 = vmul.f32 0.0078125, %v754_v33 }
 0x51a   :  { %v756_v36 = vpop.xlane.xlu1 %755 }
 0x51b   :  { %v719_v43 = vadd.f32 1e-05, %v711_v34  ;;  %v712_v46 = vmax.f32 %v708_v35, 0.0  ;;  %v1849_v57 = vmul.f32 0.0078125, %v756_v36  ;;  %v781_v1 = vmul.f32 %v1845_v52, %v1845_v52 }
 0x51c   :  { %v758_v49 = vpop.xlane.xlu0 %757  ;;  %v716_v36 = vsub.f32 %v1806_v32, %v1836_v22 }
 0x51d   :  { %1353 = vrsqrt.f32 %v719_v43  ;;  %v720_v51 = vadd.f32 1e-05, %v712_v46  ;;  %v1857_v23 = vmul.f32 0.0078125, %v758_v49  ;;  %v782_v8 = vmul.f32 %v1849_v57, %v1849_v57 }
 0x51e   :  { %v760_v54 = vpop.xlane.xlu1 %759 }
 0x51f   :  { %v1350_v56 = vpop.eup %1349  ;;  %1355 = vrsqrt.f32 %v720_v51  ;;  %v1859_v13 = vmul.f32 0.0078125, %v760_v54  ;;  %v783_v17 = vmul.f32 %v1857_v23, %v1857_v23 }
 0x520   :  { %v770_v61 = vpop.xlane.xlu0 %769  ;;  %v725_v62 = vmul.f32 %v1350_v56, %v713_v53 }
 0x521   :  { %v1352_v44 = vpop.eup %1351  ;;  %v777_v59 = vmul.f32 0.0078125, %v770_v61  ;;  %v784_v26 = vmul.f32 %v1859_v13, %v1859_v13 }
 0x522   :  { %v772_v5 = vpop.xlane.xlu1 %771  ;;  %v726_v6 = vmul.f32 %v1352_v44, %v714_v41  ;;  %v733_v7 = vmul.f32 %v732_v55, %v725_v62 }
 0x523   :  { %v785_v12 = vsub.f32 %v777_v59, %v781_v1  ;;  %v778_v9 = vmul.f32 0.0078125, %v772_v5 }
 0x524   :  { %v774_v25 = vpop.xlane.xlu0 %773  ;;  %v734_v60 = vmul.f32 %v732_v55, %v726_v6  ;;  %v741_v47 = vadd.f32 %v740_v58, %v733_v7  ;;  %v812_v6 = vrot.slane %v1843_v50, %v301_v3  ;;  %v793_v7 = vsub.f32 %v1814_v21, %v1845_v52 }
 0x525   :  { %v789_v19 = vmax.f32 %v785_v12, 0.0  ;;  %v786_v20 = vsub.f32 %v778_v9, %v782_v8  ;;  %v779_v24 = vmul.f32 0.0078125, %v774_v25  ;;  %v820_v9 = vrot.slane %v1843_v50, %v309_v4 }
 0x526   :  { %v776_v27 = vpop.xlane.xlu1 %775  ;;  %v742_v28 = vadd.f32 %v740_v58, %v734_v60  ;;  %v745_v18 = vadd.f32 %v741_v47, %v1779_v63  ;;  %v796_v52 = vsub.f32 %v1822_v39, %v1859_v13 }
 0x527   :  { %v1354_v30 = vpop.eup %1353  ;;  %v797_v31 = vadd.f32 1e-05, %v789_v19  ;;  %v790_v33 = vmax.f32 %v786_v20, 0.0  ;;  %v787_v34 = vsub.f32 %v779_v24, %v783_v17  ;;  %v780_v35 = vmul.f32 0.0078125, %v776_v27 }
 0x528   :  { %v727_v42 = vmul.f32 %v1354_v30, %v715_v2  ;;  %v746_v43 = vadd.f32 %v742_v28, %v1781_v0  ;;  %v749_v53 = vmax.f32 %v745_v18, 0.0  ;;  %v795_v17 = vsub.f32 %v1819_v38, %v1857_v23 }
 0x529   :  { %v1356_v46 = vpop.eup %1355  ;;  %1357 = vrsqrt.f32 %v797_v31  ;;  %v798_v29 = vadd.f32 1e-05, %v790_v33  ;;  %v791_v15 = vmax.f32 %v787_v34, 0.0  ;;  %v788_v49 = vsub.f32 %v780_v35, %v784_v26 }
 0x52a   :  { %v728_v51 = vmul.f32 %v1356_v46, %v716_v36  ;;  %v750_v54 = vmax.f32 %v746_v43, 0.0  ;;  %v735_v56 = vmul.f32 %v732_v55, %v727_v42  ;;  %v1897_v42 = vand.u32 127, %v130_v10 }
 0x52b   :  { %1359 = vrsqrt.f32 %v798_v29  ;;  %v799_v41 = vadd.f32 1e-05, %v791_v15  ;;  %v792_v61 = vmax.f32 %v788_v49, 0.0 }
 0x52c   :  { %v833_v62 = vpack.c.bf16 %v750_v54, %v749_v53  ;;  %v736_v44 = vmul.f32 %v732_v55, %v728_v51  ;;  %v743_v1 = vadd.f32 %v740_v58, %v735_v56  ;;  %vm984_vm0 = vcmp.lt.s32.totalorder %v1897_v42, 4 }
 0x52d   :  { %1361 = vrsqrt.f32 %v799_v41  ;;  %v800_v32 = vadd.f32 1e-05, %v792_v61  ;;  %v961_v61 = vrot.slane %v1843_v50, %v496_v40  ;;  %vm1033_vm1 = vcmp.eq.s32.totalorder %v1897_v42, 4 }
 0x52e   :  { %1253 = vmatprep.mubr.bf16.mxu1 %v833_v62  ;;  %v744_v22 = vadd.f32 %v740_v58, %v736_v44  ;;  %v747_v59 = vadd.f32 %v743_v1, %v1786_v14  ;;  %v794_v58 = vsub.f32 %v1816_v37, %v1849_v57 }
 0x52f   :  { %1363 = vrsqrt.f32 %v800_v32 }
 0x530   :  { %v748_v5 = vadd.f32 %v744_v22, %v1788_v48  ;;  %v751_v8 = vmax.f32 %v747_v59, 0.0 }
 0x532   :  { %v752_v12 = vmax.f32 %v748_v5, 0.0 }
 0x533   :  { %v1358_v55 = vpop.eup %1357 }
 0x534   :  { %v834_v25 = vpack.c.bf16 %v752_v12, %v751_v8  ;;  %v805_v60 = vmul.f32 %v1358_v55, %v793_v7 }
 0x535   :  { %v1360_v47 = vpop.eup %1359 }
 0x536   :  { %1254 = vmatmul.mubr.bf16.vlgmr.msra.gmra.mrb[4].mxu1 %v834_v25  ;;  %v806_v3 = vmul.f32 %v1360_v47, %v794_v58  ;;  %v813_v19 = vmul.f32 %v812_v6, %v805_v60 }
 0x537   :  { %v1362_v21 = vpop.eup %1361 }
 0x538   :  { %v814_v20 = vmul.f32 %v812_v6, %v806_v3  ;;  %v821_v24 = vadd.f32 %v820_v9, %v813_v19  ;;  %v807_v2 = vmul.f32 %v1362_v21, %v795_v17 }
 0x539   :  { %v1364_v4 = vpop.eup %1363 }
 0x53a   :  { %v822_v26 = vadd.f32 %v820_v9, %v814_v20  ;;  %v825_v37 = vadd.f32 %v821_v24, %v1779_v63  ;;  %v808_v57 = vmul.f32 %v1364_v4, %v796_v52  ;;  %v815_v27 = vmul.f32 %v812_v6, %v807_v2 }
 0x53b   :  { %v854_v63 = vrot.slane %v1843_v50, %v339_v16 }
 0x53c   :  { %v826_v28 = vadd.f32 %v822_v26, %v1781_v0  ;;  %v816_v18 = vmul.f32 %v812_v6, %v808_v57  ;;  %v823_v38 = vadd.f32 %v820_v9, %v815_v27  ;;  %v829_v23 = vmax.f32 %v825_v37, 0.0 }
 0x53d   :  { %v977_v37 = vrot.slane %v1843_v50, %v504_v45 }
 0x53e   :  { %v830_v30 = vmax.f32 %v826_v28, 0.0  ;;  %v824_v31 = vadd.f32 %v820_v9, %v816_v18  ;;  %v827_v33 = vadd.f32 %v823_v38, %v1786_v14 }
 0x540   :  { %v952_v34 = vpack.c.bf16 %v830_v30, %v829_v23  ;;  %v828_v39 = vadd.f32 %v824_v31, %v1788_v48  ;;  %v831_v13 = vmax.f32 %v827_v33, 0.0 }
 0x542   :  { %v832_v35 = vmax.f32 %v828_v39, 0.0  ;;  %v954_v41 = vunpack.c.l.bf16 %v952_v34  ;;  %v955_v44 = vunpack.c.h.bf16 %v952_v34 }
 0x544   :  { %v953_v36 = vpack.c.bf16 %v832_v35, %v831_v13  ;;  %v962_v32 = vmul.f32 %v961_v61, %v954_v41  ;;  %v963_v59 = vmul.f32 %v961_v61, %v955_v44 }
 0x546   :  { %v956_v22 = vunpack.c.l.bf16 %v953_v36  ;;  %v957_v5 = vunpack.c.h.bf16 %v953_v36 }
 0x548   :  { %v964_v6 = vmul.f32 %v961_v61, %v956_v22  ;;  %v965_v7 = vmul.f32 %v961_v61, %v957_v5 }
 0x609   :  { %v1255_v0 = vpop.f32.mrb[4].mxu1 }
 0x60a   :  { %v937_v43 = vpop.f32.mrb[5].mxu1  ;;  %v946_v46 = vadd.f32 %v1255_v0, %v854_v63 }
 0x60b   :  { %v938_v29 = vadd.f32 %v937_v43, %v854_v63  ;;  %v1256_v15 = vpop.f32.mrb[6].mxu1 }
 0x60c   :  { %v940_v49 = vpop.f32.mrb[7].mxu1  ;;  %v949_v48 = vadd.f32 %v1256_v15, %v854_v63  ;;  %v1146_v53 = vclamps-f32 %v946_v46, 20.0 }
 0x60d   :  { %v1144_v14 = vclamps-f32 %v938_v29, 20.0  ;;  %v941_v51 = vadd.f32 %v940_v49, %v854_v63 }
 0x60e   :  { %v1147_v16 = vclamps-f32 %v949_v48, 20.0  ;;  %v995_v62 = vsel %vm984_vm0, %v1146_v53, -1e+30 }
 0x60f   :  { %v1145_v54 = vclamps-f32 %v941_v51, 20.0  ;;  %v993_v56 = vsel %vm984_vm0, %v1144_v14, -1e+30 }
 0x610   :  { %997 = vmax.xlane.f32.xlu0 %v993_v56  ;;  %v996_v1 = vsel %vm984_vm0, %v1147_v16, -1e+30 }
 0x611   :  { %v994_v10 = vsel %vm984_vm0, %v1145_v54, -1e+30 }
 0x612   :  { %999 = vmax.xlane.f32.xlu1 %v994_v10 }
 0x614   :  { %1001 = vmax.xlane.f32.xlu0 %v995_v62 }
 0x616   :  { %1003 = vmax.xlane.f32.xlu1 %v996_v1 }
 0x618   :  { %966 = vadd.xlane.f32.xlu0 %v962_v32 }
 0x61a   :  { %968 = vadd.xlane.f32.xlu1 %v963_v59 }
 0x61c   :  { %970 = vadd.xlane.f32.xlu0 %v964_v6 }
 0x61e   :  { %972 = vadd.xlane.f32.xlu1 %v965_v7 }
 0x69d   :  { %v998_v40 = vpop.xlane.xlu0 %997 }
 0x69e   :  { %v1005_v55 = vsub.f32 %v993_v56, %v998_v40 }
 0x69f   :  { %v1000_v8 = vpop.xlane.xlu1 %999 }
 0x6a0   :  { %v1006_v25 = vsub.f32 %v994_v10, %v1000_v8  ;;  %v1009_v17 = vmul.f32 1.442695, %v1005_v55 }
 0x6a1   :  { %v1002_v12 = vpop.xlane.xlu0 %1001 }
 0x6a2   :  { %v1007_v9 = vsub.f32 %v995_v62, %v1002_v12  ;;  %v1011_v19 = vmul.f32 1.442695, %v1006_v25 }
 0x6a3   :  { %v1004_v58 = vpop.xlane.xlu1 %1003 }
 0x6a4   :  { %v1013_v60 = vmul.f32 1.442695, %v1007_v9  ;;  %v1008_v47 = vsub.f32 %v996_v1, %v1004_v58 }
 0x6a5   :  { %v967_v4 = vpop.xlane.xlu0 %966 }
 0x6a6   :  { %1365 = vpow2.f32 %v1013_v60  ;;  %v1015_v3 = vmul.f32 1.442695, %v1008_v47  ;;  %v978_v23 = vadd.f32 %v977_v37, %v967_v4 }
 0x6a7   :  { %v969_v2 = vpop.xlane.xlu1 %968 }
 0x6a8   :  { %1367 = vpow2.f32 %v1015_v3  ;;  %v979_v18 = vadd.f32 %v977_v37, %v969_v2 }
 0x6a9   :  { %1369 = vpow2.f32 %v1009_v17  ;;  %v971_v57 = vpop.xlane.xlu0 %970 }
 0x6aa   :  { %1371 = vpow2.f32 %v1011_v19  ;;  %v980_v28 = vadd.f32 %v977_v37, %v971_v57  ;;  %v1272_v30 = vpack.i.bf16 %v979_v18, %v978_v23 }
 0x6ab   :  { %v973_v26 = vpop.xlane.xlu1 %972 }
 0x6ac   :  { %v981_v27 = vadd.f32 %v977_v37, %v973_v26 }
 0x6ae   :  { %v1278_v38 = vpack.i.bf16 %v981_v27, %v980_v28 }
 0x6b0   :  { %v1366_v21 = vpop.eup %1365 }
 0x6b1   :  { %1021 = vadd.xlane.f32.xlu0 %v1366_v21 }
 0x6b2   :  { %v1368_v52 = vpop.eup %1367 }
 0x6b3   :  { %1023 = vadd.xlane.f32.xlu1 %v1368_v52  ;;  %v1370_v20 = vpop.eup %1369 }
 0x6b4   :  { %v1372_v24 = vpop.eup %1371 }
 0x6b5   :  { %1017 = vadd.xlane.f32.xlu0 %v1370_v20 }
 0x6b7   :  { %1019 = vadd.xlane.f32.xlu1 %v1372_v24 }
 0x6c8   :  { %1279 = vperm.xlu1 %1277, %v1278_v38  }
 0x6cb   :  { %1273 = vperm.xlu0 %1271, %v1272_v30  }
 0x73e   :  { %v1022_v31 = vpop.xlane.xlu0 %1021 }
 0x73f   :  { %1373 = vrcp.f32 %v1022_v31 }
 0x740   :  { %v1024_v33 = vpop.xlane.xlu1 %1023 }
 0x741   :  { %1375 = vrcp.f32 %v1024_v33 }
 0x742   :  { %v1018_v34 = vpop.xlane.xlu0 %1017 }
 0x743   :  { %1377 = vrcp.f32 %v1018_v34 }
 0x744   :  { %v1020_v39 = vpop.xlane.xlu1 %1019 }
 0x745   :  { %1379 = vrcp.f32 %v1020_v39 }
 0x748   :  { %v1280_v11 = vpop.permute.xlu1 %1279 }
 0x749   :  { %v1374_v45 = vpop.eup %1373  ;;  %v1282_v50 = vunpack.i.h.bf16 %v1280_v11  ;;  %v1281_v13 = vunpack.i.l.bf16 %v1280_v11 }
 0x74a   :  { %v1030_v35 = vmul.f32 %v1374_v45, %v1366_v21  ;;  %v1274_v36 = vpop.permute.xlu0 %1273 }
 0x74b   :  { %v1376_v63 = vpop.eup %1375  ;;  %v1056_v0 = vsel %vm1033_vm1, %v1281_v13, 0.0  ;;  %v1057_v29 = vsel %vm1033_vm1, %v1282_v50, 0.0  ;;  %v1276_v15 = vunpack.i.h.bf16 %v1274_v36  ;;  %v1275_v49 = vunpack.i.l.bf16 %v1274_v36 }
 0x74c   :  { %v1032_v43 = vmul.f32 %v1376_v63, %v1368_v52  ;;  %v1060_v48 = vsel %vm984_vm0, %v1030_v35, %v1056_v0 }
 0x74d   :  { %v1378_v46 = vpop.eup %1377  ;;  %v1055_v16 = vsel %vm1033_vm1, %v1276_v15, 0.0  ;;  %v1054_v10 = vsel %vm1033_vm1, %v1275_v49, 0.0 }
 0x74e   :  { %v1061_v14 = vsel %vm984_vm0, %v1032_v43, %v1057_v29  ;;  %v1026_v51 = vmul.f32 %v1378_v46, %v1370_v20 }
 0x74f   :  { %v1380_v53 = vpop.eup %1379  ;;  %v1164_v54 = vpack.c.bf16 %v1061_v14, %v1060_v48 }
 0x750   :  { %v1028_v56 = vmul.f32 %v1380_v53, %v1372_v24  ;;  %v1058_v61 = vsel %vm984_vm0, %v1026_v51, %v1054_v10 }
 0x751   :  { %1166 = vst [vmem:[#allocation13 + $0x8] sm:$0xff] %v1164_v54  }
 0x752   :  { %v1059_v41 = vsel %vm984_vm0, %v1028_v56, %v1055_v16 }
 0x753   :  { %v1159_v62 = vpack.c.bf16 %v1059_v41, %v1058_v61 }
 0x755   :  { %1160 = vst [vmem:[#allocation13] sm:$0xff] %v1159_v62  }
 0x756   :  { %1524 = shalt.err (!%p1521_p10)
}
 0x757   :  { %s1525_s27 = scalar_lea.hbm %s1952_s6, 256 }
 0x758   :  { %p1526_p11 = scmp.ne.s32.totalorder %s1952_s6, %s1525_s27  ;;  %p1529_p12 = scmp.lt.u32.totalorder %s1525_s27, %s1952_s6 }
 0x75a   :  { %p1531_p13 = pnand %p1529_p12, %p1526_p11 }
 0x75c   :  { %1534 = shalt.err (!%p1531_p13)
}
 0x75d   :  { %1093 = dma.vmem_to_hbm [thread:$0]  %s1088_s22, 256, %s1952_s6, [#allocation4], %s1547_s9, %s1547_s9, %s1548_s10  }
 0x75e   :  { %1543 = dma.done.wait [#allocation4], 256  }
 0x75f   :  { %1544 = vsyncadd [#allocation4], 4294967040 }
 0x760   :  { %1097 = vsyncpa [#allocation3], 1 }
 0x761   :  { %1098 = vsyncpa [#allocation6], 1 }
 0x762   :  { %1099 = vsyncpa [#allocation9], 1 }
 0x763   :  { %1100 = vsyncpa [#allocation12], 1 }
 0x764   :  { %1101 = vsyncpa [#allocation4], 1 }

</bundles_post_ra>
